<compile_context>
chip_gen: v7x
topology: tpu7x:2x2x1
jax: 0.10.0
libtpu: 0.0.40
codegen_flags: <defaults>
</compile_context>

<pallas_src>
import functools

import jax
import jax.numpy as jnp
from jax import lax
from jax.experimental import pallas as pl
from jax.experimental.pallas import tpu as pltpu

MAX_TILE_M = 2048  # pass-B row tile upper bound


def _round_up(x, m):
    return (x + m - 1) // m * m


# ---------------------------------------------------------------------------
# Pass A: fused conv1(k4,s2,p1) + ReLU + conv2(k3,s1,p1) + bias + BN stats
# ---------------------------------------------------------------------------
def _fused_encoder_kernel(xs_ref, w1_ref, b1_ref, w2_ref, b2_ref,
                          y2_ref, ssum_ref, ssq_ref, y1p_ref, *, ho, wo):
    # xs_ref : [1, ho+1, wo+1, 4*cin] bf16  (space-to-depth'd padded input)
    # w1_ref : [4, 4*cin, cout]       bf16  (conv1 as 2x2/stride-1 taps)
    # b1_ref : [1, cout]              f32
    # w2_ref : [9, cout, cout]        bf16  (conv2 3x3 taps)
    # b2_ref : [1, cout]              f32
    # y2_ref : [1, ho, wo, cout]      f32   (conv2 output, pre-BN)
    # ssum/ssq_ref : [1, 1, cout]     f32   (per-image BN partial sums)
    # y1p_ref (scratch): [ho+2, wo+2, cout] bf16 (zero-padded conv1 output)
    cout = w1_ref.shape[2]
    kc = xs_ref.shape[3]
    m = ho * wo

    # ---- conv1: k=4,s=2,p=1 expressed as 2x2/stride-1 over space-to-depth --
    acc1 = jnp.zeros((m, cout), jnp.float32)
    for t, (dr, dc) in enumerate(((0, 0), (0, 1), (1, 0), (1, 1))):
        tap = xs_ref[0, dr:dr + ho, dc:dc + wo, :].reshape(m, kc)
        acc1 = acc1 + jnp.dot(tap, w1_ref[t],
                              preferred_element_type=jnp.float32)
    y1 = jnp.maximum(acc1 + b1_ref[...], 0.0).astype(y1p_ref.dtype)

    # conv1 output stays resident in VMEM (bf16), zero border = conv2 padding.
    # Re-zero every step: correct regardless of how the grid is sharded
    # across TensorCores; interior is fully overwritten anyway.
    y1p_ref[...] = jnp.zeros_like(y1p_ref)
    y1p_ref[1:ho + 1, 1:wo + 1, :] = y1.reshape(ho, wo, cout)

    # ---- conv2: 3x3, stride 1, 'same' -------------------------------------
    acc2 = jnp.zeros((m, cout), jnp.float32)
    t = 0
    for di in range(3):
        for dj in range(3):
            tap = y1p_ref[di:di + ho, dj:dj + wo, :].reshape(m, cout)
            acc2 = acc2 + jnp.dot(tap, w2_ref[t],
                                  preferred_element_type=jnp.float32)
            t += 1

    # Per-image BN partial sums on the PRE-BIAS accumulator (better
    # conditioned than E[y^2]-E[y]^2 when the bias dominates the mean);
    # the bias is added back analytically in the wrapper.
    ssum_ref[0] = jnp.sum(acc2, axis=0, keepdims=True)
    ssq_ref[0] = jnp.sum(acc2 * acc2, axis=0, keepdims=True)

    y2_ref[0] = (acc2 + b2_ref[...]).reshape(ho, wo, cout)


def _fused_conv_stats(xs, w1s, b1, w2s, b2, ho, wo):
    n, hs, ws, kc = xs.shape
    cout = w1s.shape[2]
    kern = functools.partial(_fused_encoder_kernel, ho=ho, wo=wo)

    # Per-step VMEM footprint: double-buffered xs / y2 blocks, (re)fetched
    # weights & biases, bf16 y1 scratch, f32 accumulators, plus margin.
    need = 2 * hs * ws * kc * 2                       # xs block (bf16), x2 buf
    need += 2 * ho * wo * cout * 4                    # y2 block (f32), x2 buf
    need += 2 * (w1s.size * 2 + w2s.size * 2 + 4 * cout * 4)
    need += (ho + 2) * (wo + 2) * cout * 2            # y1 scratch (bf16)
    need += 3 * ho * wo * cout * 4                    # live f32 accumulators
    need += 4 << 20
    vmem = int(min(max(need, 16 << 20), 48 << 20))    # <=48MiB: safe on v7x

    return pl.pallas_call(
        kern,
        out_shape=(
            jax.ShapeDtypeStruct((n, ho, wo, cout), jnp.float32),  # y2
            jax.ShapeDtypeStruct((n, 1, cout), jnp.float32),       # sum
            jax.ShapeDtypeStruct((n, 1, cout), jnp.float32),       # sum of sq
        ),
        grid=(n,),
        in_specs=[
            pl.BlockSpec((1, hs, ws, kc), lambda i: (i, 0, 0, 0)),
            pl.BlockSpec((4, kc, cout), lambda i: (0, 0, 0)),   # resident
            pl.BlockSpec((1, cout), lambda i: (0, 0)),          # resident
            pl.BlockSpec((9, cout, cout), lambda i: (0, 0, 0)),  # resident
            pl.BlockSpec((1, cout), lambda i: (0, 0)),          # resident
        ],
        out_specs=(
            pl.BlockSpec((1, ho, wo, cout), lambda i: (i, 0, 0, 0)),
            pl.BlockSpec((1, 1, cout), lambda i: (i, 0, 0)),    # per-image
            pl.BlockSpec((1, 1, cout), lambda i: (i, 0, 0)),    # partial sums
        ),
        scratch_shapes=[pltpu.VMEM((ho + 2, wo + 2, cout), jnp.bfloat16)],
        compiler_params=pltpu.CompilerParams(
            dimension_semantics=("parallel",),   # images independent
            vmem_limit_bytes=vmem),
    )(xs, w1s, b1, w2s, b2)


# ---------------------------------------------------------------------------
# Pass B: BatchNorm normalize  out = y2 * scale + shift  (tiled over rows)
# ---------------------------------------------------------------------------
def _scale_shift_kernel(y_ref, scale_ref, shift_ref, o_ref):
    o_ref[...] = y_ref[...] * scale_ref[...] + shift_ref[...]


def _scale_shift(y2d, scale, shift):
    m, c = y2d.shape
    tile = _round_up(m, 8) if m <= MAX_TILE_M else MAX_TILE_M
    m_pad = _round_up(m, tile)
    yp = jnp.pad(y2d, ((0, m_pad - m), (0, 0)))
    vmem = int(min(max(4 * tile * c * 4 + (4 << 20), 16 << 20), 48 << 20))
    out = pl.pallas_call(
        _scale_shift_kernel,
        out_shape=jax.ShapeDtypeStruct((m_pad, c), jnp.float32),
        grid=(m_pad // tile,),
        in_specs=[
            pl.BlockSpec((tile, c), lambda i: (i, 0)),
            pl.BlockSpec((1, c), lambda i: (0, 0)),
            pl.BlockSpec((1, c), lambda i: (0, 0)),
        ],
        out_specs=pl.BlockSpec((tile, c), lambda i: (i, 0)),
        compiler_params=pltpu.CompilerParams(
            dimension_semantics=("parallel",),
            vmem_limit_bytes=vmem),
    )(yp, scale, shift)
    return out[:m]


# ---------------------------------------------------------------------------
# EncoderBlock forward
# ---------------------------------------------------------------------------
def encoder_block_forward(x_nchw, params, eps=1e-5):
    """x_nchw: [N, Cin, H, W] f32 -> [N, Cout, H//2, W//2] f32."""
    w1, b1, w2, b2, gamma, beta = params            # w1: [4,4,Cin,Cout] HWIO
    n, cin, h, w = x_nchw.shape
    cout = w1.shape[3]
    assert h % 2 == 0 and w % 2 == 0, "stride-2 conv expects even spatial dims"
    ho, wo = h // 2, w // 2
    hs, ws = ho + 1, wo + 1

    x = jnp.transpose(x_nchw, (0, 2, 3, 1)).astype(jnp.float32)     # NHWC
    xp = jnp.pad(x, ((0, 0), (1, 1), (1, 1), (0, 0)))               # conv1 pad
    # space-to-depth by 2: turns the k=4,s=2 conv into a k=2,s=1 conv.
    # Exactly 1x the padded-input data (no im2col inflation).
    xs = xp.reshape(n, hs, 2, ws, 2, cin)
    xs = jnp.transpose(xs, (0, 1, 3, 2, 4, 5)).reshape(n, hs, ws, 4 * cin)
    xs = xs.astype(jnp.bfloat16)

    # conv1 weight [kh,kw,ci,co] -> [tap=(tr*2+tc), (dr,dc,ci), co]
    w1s = w1.reshape(2, 2, 2, 2, cin, cout)          # [tr, dr, tc, dc, ci, co]
    w1s = jnp.transpose(w1s, (0, 2, 1, 3, 4, 5)).reshape(4, 4 * cin, cout)
    w1s = w1s.astype(jnp.bfloat16)
    w2s = w2.reshape(9, cout, cout).astype(jnp.bfloat16)
    b1r = b1.reshape(1, cout).astype(jnp.float32)
    b2r = b2.reshape(1, cout).astype(jnp.float32)

    y2, ssum, ssq = _fused_conv_stats(xs, w1s, b1r, w2s, b2r, ho, wo)

    # Global training-mode BatchNorm statistics (biased 1/M, PyTorch-style),
    # finished in XLA from the tiny per-image partial sums.
    m2 = n * ho * wo
    s = jnp.sum(ssum, axis=0)                        # [1, cout] (pre-bias)
    sq = jnp.sum(ssq, axis=0)                        # [1, cout]
    mean_pre = s / float(m2)
    var = jnp.maximum(sq / float(m2) - mean_pre * mean_pre, 0.0)
    mean = mean_pre + b2r
    inv = lax.rsqrt(var + eps)
    scale = gamma.reshape(1, cout) * inv
    shift = beta.reshape(1, cout) - mean * scale

    out = _scale_shift(y2.reshape(m2, cout), scale, shift)
    out = out.reshape(n, ho, wo, cout)
    return jnp.transpose(out, (0, 3, 1, 2))          # back to NCHW


def init_params(key, in_channels, out_channels):
    k1, k2, k3, k4 = jax.random.split(key, 4)
    lim1 = 1.0 / float(4 * 4 * in_channels) ** 0.5
    lim2 = 1.0 / float(3 * 3 * out_channels) ** 0.5
    w1 = jax.random.uniform(k1, (4, 4, in_channels, out_channels),
                            jnp.float32, -lim1, lim1)
    b1 = jax.random.uniform(k2, (out_channels,), jnp.float32, -lim1, lim1)
    w2 = jax.random.uniform(k3, (3, 3, out_channels, out_channels),
                            jnp.float32, -lim2, lim2)
    b2 = jax.random.uniform(k4, (out_channels,), jnp.float32, -lim2, lim2)
    gamma = jnp.ones((out_channels,), jnp.float32)   # fresh BatchNorm weight
    beta = jnp.zeros((out_channels,), jnp.float32)   # fresh BatchNorm bias
    return (w1, b1, w2, b2, gamma, beta)


# ---------------------------------------------------------------------------
# Pure-JAX f32 reference for a sanity check
# ---------------------------------------------------------------------------
def _reference_forward(x_nchw, params, eps=1e-5):
    w1, b1, w2, b2, gamma, beta = params
    x = jnp.transpose(x_nchw, (0, 2, 3, 1))
    dn = ('NHWC', 'HWIO', 'NHWC')
    y1 = lax.conv_general_dilated(x, w1, (2, 2), [(1, 1), (1, 1)],
                                  dimension_numbers=dn) + b1
    y1 = jnp.maximum(y1, 0.0)
    y2 = lax.conv_general_dilated(y1, w2, (1, 1), [(1, 1), (1, 1)],
                                  dimension_numbers=dn) + b2
    mean = jnp.mean(y2, axis=(0, 1, 2), keepdims=True)
    var = jnp.mean((y2 - mean) ** 2, axis=(0, 1, 2), keepdims=True)
    out = gamma * (y2 - mean) * lax.rsqrt(var + eps) + beta
    return jnp.transpose(out, (0, 3, 1, 2))


if __name__ == "__main__":
    in_channels, out_channels = 4, 8
    N, H, W = 2, 16, 16

    key = jax.random.PRNGKey(0)
    kx, kp = jax.random.split(key)
    x = jax.random.normal(kx, (N, in_channels, H, W), jnp.float32)
    params = init_params(kp, in_channels, out_channels)

    fwd = jax.jit(encoder_block_forward)
    out = fwd(x, params)
    jax.block_until_ready(out)

    assert out.shape == (N, out_channels, H // 2, W // 2), out.shape
    assert bool(jnp.all(jnp.isfinite(out)))

    ref = _reference_forward(x, params)
    max_err = float(jnp.max(jnp.abs(out - ref)))
    assert max_err < 0.15, f"max abs err vs f32 reference: {max_err}"

    print("KERNEL_OK")
</pallas_src>

<mosaic_0001>
module attributes {stable_mosaic.version = 11 : i64} {
  func.func @_fused_encoder_kernel(%arg0: i32, %arg1: memref<1x9x9x16xbf16, #tpu.memory_space<vmem>>, %arg2: memref<4x16x8xbf16, #tpu.memory_space<vmem>>, %arg3: memref<1x8xf32, #tpu.memory_space<vmem>>, %arg4: memref<9x8x8xbf16, #tpu.memory_space<vmem>>, %arg5: memref<1x8xf32, #tpu.memory_space<vmem>>, %arg6: memref<1x8x8x8xf32, #tpu.memory_space<vmem>>, %arg7: memref<1x1x8xf32, #tpu.memory_space<vmem>>, %arg8: memref<1x1x8xf32, #tpu.memory_space<vmem>>, %arg9: memref<10x10x8xbf16, #tpu.memory_space<vmem>>) attributes {dimension_semantics = [#tpu.dimension_semantics<parallel>], iteration_bounds = array<i64: 2>, scalar_prefetch = 0 : i64, scratch_operands = 1 : i64, tpu.core_type = #tpu.core_type<tc>, window_params = [{transform_indices = @transform_0, window_bounds = array<i64: 1, 9, 9, 16>}, {pipeline_mode = #tpu.pipeline_mode<synchronous>, transform_indices = @transform_1, window_bounds = array<i64: 4, 16, 8>}, {pipeline_mode = #tpu.pipeline_mode<synchronous>, transform_indices = @transform_2, window_bounds = array<i64: 1, 8>}, {pipeline_mode = #tpu.pipeline_mode<synchronous>, transform_indices = @transform_3, window_bounds = array<i64: 9, 8, 8>}, {pipeline_mode = #tpu.pipeline_mode<synchronous>, transform_indices = @transform_4, window_bounds = array<i64: 1, 8>}, {transform_indices = @transform_5, window_bounds = array<i64: 1, 8, 8, 8>}, {transform_indices = @transform_6, window_bounds = array<i64: 1, 1, 8>}, {transform_indices = @transform_7, window_bounds = array<i64: 1, 1, 8>}]} {
    %cst = arith.constant 0.000000e+00 : f32
    %0 = vector.broadcast %cst : f32 to vector<64x8xf32>
    %c0 = arith.constant 0 : index
    %c0_0 = arith.constant 0 : index
    %c0_1 = arith.constant 0 : index
    %c0_2 = arith.constant 0 : index
    %1 = vector.load %arg1[%c0, %c0_0, %c0_1, %c0_2] : memref<1x9x9x16xbf16, #tpu.memory_space<vmem>>, vector<1x8x8x16xbf16>
    %2 = vector.shape_cast %1 : vector<1x8x8x16xbf16> to vector<8x8x16xbf16>
    %3 = vector.shape_cast %2 : vector<8x8x16xbf16> to vector<64x16xbf16>
    %c0_3 = arith.constant 0 : index
    %c0_4 = arith.constant 0 : index
    %c0_5 = arith.constant 0 : index
    %4 = vector.load %arg2[%c0_3, %c0_4, %c0_5] : memref<4x16x8xbf16, #tpu.memory_space<vmem>>, vector<1x16x8xbf16>
    %5 = vector.shape_cast %4 : vector<1x16x8xbf16> to vector<16x8xbf16>
    %cst_6 = arith.constant dense<0.000000e+00> : vector<64x8xf32>
    %6 = tpu.matmul %3, %5, %cst_6 {dimension_numbers = #tpu.dot_dimension_numbers<[1], [0], [0], [1], [0, 0, 1, 1], [], []>} : vector<64x16xbf16>, vector<16x8xbf16>, vector<64x8xf32> -> vector<64x8xf32>
    %7 = arith.addf %0, %6 : vector<64x8xf32>
    %c0_7 = arith.constant 0 : index
    %c0_8 = arith.constant 0 : index
    %c1 = arith.constant 1 : index
    %c0_9 = arith.constant 0 : index
    %8 = vector.load %arg1[%c0_7, %c0_8, %c1, %c0_9] : memref<1x9x9x16xbf16, #tpu.memory_space<vmem>>, vector<1x8x8x16xbf16>
    %9 = vector.shape_cast %8 : vector<1x8x8x16xbf16> to vector<8x8x16xbf16>
    %10 = vector.shape_cast %9 : vector<8x8x16xbf16> to vector<64x16xbf16>
    %c1_10 = arith.constant 1 : index
    %c0_11 = arith.constant 0 : index
    %c0_12 = arith.constant 0 : index
    %11 = vector.load %arg2[%c1_10, %c0_11, %c0_12] : memref<4x16x8xbf16, #tpu.memory_space<vmem>>, vector<1x16x8xbf16>
    %12 = vector.shape_cast %11 : vector<1x16x8xbf16> to vector<16x8xbf16>
    %cst_13 = arith.constant dense<0.000000e+00> : vector<64x8xf32>
    %13 = tpu.matmul %10, %12, %cst_13 {dimension_numbers = #tpu.dot_dimension_numbers<[1], [0], [0], [1], [0, 0, 1, 1], [], []>} : vector<64x16xbf16>, vector<16x8xbf16>, vector<64x8xf32> -> vector<64x8xf32>
    %14 = arith.addf %7, %13 : vector<64x8xf32>
    %c0_14 = arith.constant 0 : index
    %c1_15 = arith.constant 1 : index
    %c0_16 = arith.constant 0 : index
    %c0_17 = arith.constant 0 : index
    %15 = vector.load %arg1[%c0_14, %c1_15, %c0_16, %c0_17] : memref<1x9x9x16xbf16, #tpu.memory_space<vmem>>, vector<1x8x8x16xbf16>
    %16 = vector.shape_cast %15 : vector<1x8x8x16xbf16> to vector<8x8x16xbf16>
    %17 = vector.shape_cast %16 : vector<8x8x16xbf16> to vector<64x16xbf16>
    %c2 = arith.constant 2 : index
    %c0_18 = arith.constant 0 : index
    %c0_19 = arith.constant 0 : index
    %18 = vector.load %arg2[%c2, %c0_18, %c0_19] : memref<4x16x8xbf16, #tpu.memory_space<vmem>>, vector<1x16x8xbf16>
    %19 = vector.shape_cast %18 : vector<1x16x8xbf16> to vector<16x8xbf16>
    %cst_20 = arith.constant dense<0.000000e+00> : vector<64x8xf32>
    %20 = tpu.matmul %17, %19, %cst_20 {dimension_numbers = #tpu.dot_dimension_numbers<[1], [0], [0], [1], [0, 0, 1, 1], [], []>} : vector<64x16xbf16>, vector<16x8xbf16>, vector<64x8xf32> -> vector<64x8xf32>
    %21 = arith.addf %14, %20 : vector<64x8xf32>
    %c0_21 = arith.constant 0 : index
    %c1_22 = arith.constant 1 : index
    %c1_23 = arith.constant 1 : index
    %c0_24 = arith.constant 0 : index
    %22 = vector.load %arg1[%c0_21, %c1_22, %c1_23, %c0_24] : memref<1x9x9x16xbf16, #tpu.memory_space<vmem>>, vector<1x8x8x16xbf16>
    %23 = vector.shape_cast %22 : vector<1x8x8x16xbf16> to vector<8x8x16xbf16>
    %24 = vector.shape_cast %23 : vector<8x8x16xbf16> to vector<64x16xbf16>
    %c3 = arith.constant 3 : index
    %c0_25 = arith.constant 0 : index
    %c0_26 = arith.constant 0 : index
    %25 = vector.load %arg2[%c3, %c0_25, %c0_26] : memref<4x16x8xbf16, #tpu.memory_space<vmem>>, vector<1x16x8xbf16>
    %26 = vector.shape_cast %25 : vector<1x16x8xbf16> to vector<16x8xbf16>
    %cst_27 = arith.constant dense<0.000000e+00> : vector<64x8xf32>
    %27 = tpu.matmul %24, %26, %cst_27 {dimension_numbers = #tpu.dot_dimension_numbers<[1], [0], [0], [1], [0, 0, 1, 1], [], []>} : vector<64x16xbf16>, vector<16x8xbf16>, vector<64x8xf32> -> vector<64x8xf32>
    %28 = arith.addf %21, %27 : vector<64x8xf32>
    %c0_28 = arith.constant 0 : index
    %c0_29 = arith.constant 0 : index
    %29 = vector.load %arg3[%c0_28, %c0_29] : memref<1x8xf32, #tpu.memory_space<vmem>>, vector<1x8xf32>
    %30 = vector.broadcast %29 : vector<1x8xf32> to vector<64x8xf32>
    %31 = arith.addf %28, %30 : vector<64x8xf32>
    %cst_30 = arith.constant 0.000000e+00 : f32
    %32 = vector.broadcast %cst_30 : f32 to vector<64x8xf32>
    %33 = arith.maximumf %31, %32 : vector<64x8xf32>
    %34 = arith.truncf %33 : vector<64x8xf32> to vector<64x8xbf16>
    %cst_31 = arith.constant 0.000000e+00 : bf16
    %35 = vector.broadcast %cst_31 : bf16 to vector<10x10x8xbf16>
    %c0_32 = arith.constant 0 : index
    %c0_33 = arith.constant 0 : index
    %c0_34 = arith.constant 0 : index
    %36 = vector.load %arg9[%c0_32, %c0_33, %c0_34] : memref<10x10x8xbf16, #tpu.memory_space<vmem>>, vector<10x10x8xbf16>
    tpu.vector_store %arg9[%c0_32, %c0_33, %c0_34], %35 {strides = array<i32>} : memref<10x10x8xbf16, #tpu.memory_space<vmem>>, vector<10x10x8xbf16>,
    %37 = vector.shape_cast %34 : vector<64x8xbf16> to vector<8x8x8xbf16>
    %c1_35 = arith.constant 1 : index
    %c1_36 = arith.constant 1 : index
    %c0_37 = arith.constant 0 : index
    %38 = vector.load %arg9[%c1_35, %c1_36, %c0_37] : memref<10x10x8xbf16, #tpu.memory_space<vmem>>, vector<8x8x8xbf16>
    tpu.vector_store %arg9[%c1_35, %c1_36, %c0_37], %37 {strides = array<i32>} : memref<10x10x8xbf16, #tpu.memory_space<vmem>>, vector<8x8x8xbf16>,
    %cst_38 = arith.constant 0.000000e+00 : f32
    %39 = vector.broadcast %cst_38 : f32 to vector<64x8xf32>
    %c0_39 = arith.constant 0 : index
    %c0_40 = arith.constant 0 : index
    %c0_41 = arith.constant 0 : index
    %40 = vector.load %arg9[%c0_39, %c0_40, %c0_41] : memref<10x10x8xbf16, #tpu.memory_space<vmem>>, vector<8x8x8xbf16>
    %41 = vector.shape_cast %40 : vector<8x8x8xbf16> to vector<64x8xbf16>
    %c0_42 = arith.constant 0 : index
    %c0_43 = arith.constant 0 : index
    %c0_44 = arith.constant 0 : index
    %42 = vector.load %arg4[%c0_42, %c0_43, %c0_44] : memref<9x8x8xbf16, #tpu.memory_space<vmem>>, vector<1x8x8xbf16>
    %43 = vector.shape_cast %42 : vector<1x8x8xbf16> to vector<8x8xbf16>
    %cst_45 = arith.constant dense<0.000000e+00> : vector<64x8xf32>
    %44 = tpu.matmul %41, %43, %cst_45 {dimension_numbers = #tpu.dot_dimension_numbers<[1], [0], [0], [1], [0, 0, 1, 1], [], []>} : vector<64x8xbf16>, vector<8x8xbf16>, vector<64x8xf32> -> vector<64x8xf32>
    %45 = arith.addf %39, %44 : vector<64x8xf32>
    %c0_46 = arith.constant 0 : index
    %c1_47 = arith.constant 1 : index
    %c0_48 = arith.constant 0 : index
    %46 = vector.load %arg9[%c0_46, %c1_47, %c0_48] : memref<10x10x8xbf16, #tpu.memory_space<vmem>>, vector<8x8x8xbf16>
    %47 = vector.shape_cast %46 : vector<8x8x8xbf16> to vector<64x8xbf16>
    %c1_49 = arith.constant 1 : index
    %c0_50 = arith.constant 0 : index
    %c0_51 = arith.constant 0 : index
    %48 = vector.load %arg4[%c1_49, %c0_50, %c0_51] : memref<9x8x8xbf16, #tpu.memory_space<vmem>>, vector<1x8x8xbf16>
    %49 = vector.shape_cast %48 : vector<1x8x8xbf16> to vector<8x8xbf16>
    %cst_52 = arith.constant dense<0.000000e+00> : vector<64x8xf32>
    %50 = tpu.matmul %47, %49, %cst_52 {dimension_numbers = #tpu.dot_dimension_numbers<[1], [0], [0], [1], [0, 0, 1, 1], [], []>} : vector<64x8xbf16>, vector<8x8xbf16>, vector<64x8xf32> -> vector<64x8xf32>
    %51 = arith.addf %45, %50 : vector<64x8xf32>
    %c0_53 = arith.constant 0 : index
    %c2_54 = arith.constant 2 : index
    %c0_55 = arith.constant 0 : index
    %52 = vector.load %arg9[%c0_53, %c2_54, %c0_55] : memref<10x10x8xbf16, #tpu.memory_space<vmem>>, vector<8x8x8xbf16>
    %53 = vector.shape_cast %52 : vector<8x8x8xbf16> to vector<64x8xbf16>
    %c2_56 = arith.constant 2 : index
    %c0_57 = arith.constant 0 : index
    %c0_58 = arith.constant 0 : index
    %54 = vector.load %arg4[%c2_56, %c0_57, %c0_58] : memref<9x8x8xbf16, #tpu.memory_space<vmem>>, vector<1x8x8xbf16>
    %55 = vector.shape_cast %54 : vector<1x8x8xbf16> to vector<8x8xbf16>
    %cst_59 = arith.constant dense<0.000000e+00> : vector<64x8xf32>
    %56 = tpu.matmul %53, %55, %cst_59 {dimension_numbers = #tpu.dot_dimension_numbers<[1], [0], [0], [1], [0, 0, 1, 1], [], []>} : vector<64x8xbf16>, vector<8x8xbf16>, vector<64x8xf32> -> vector<64x8xf32>
    %57 = arith.addf %51, %56 : vector<64x8xf32>
    %c1_60 = arith.constant 1 : index
    %c0_61 = arith.constant 0 : index
    %c0_62 = arith.constant 0 : index
    %58 = vector.load %arg9[%c1_60, %c0_61, %c0_62] : memref<10x10x8xbf16, #tpu.memory_space<vmem>>, vector<8x8x8xbf16>
    %59 = vector.shape_cast %58 : vector<8x8x8xbf16> to vector<64x8xbf16>
    %c3_63 = arith.constant 3 : index
    %c0_64 = arith.constant 0 : index
    %c0_65 = arith.constant 0 : index
    %60 = vector.load %arg4[%c3_63, %c0_64, %c0_65] : memref<9x8x8xbf16, #tpu.memory_space<vmem>>, vector<1x8x8xbf16>
    %61 = vector.shape_cast %60 : vector<1x8x8xbf16> to vector<8x8xbf16>
    %cst_66 = arith.constant dense<0.000000e+00> : vector<64x8xf32>
    %62 = tpu.matmul %59, %61, %cst_66 {dimension_numbers = #tpu.dot_dimension_numbers<[1], [0], [0], [1], [0, 0, 1, 1], [], []>} : vector<64x8xbf16>, vector<8x8xbf16>, vector<64x8xf32> -> vector<64x8xf32>
    %63 = arith.addf %57, %62 : vector<64x8xf32>
    %c1_67 = arith.constant 1 : index
    %c1_68 = arith.constant 1 : index
    %c0_69 = arith.constant 0 : index
    %64 = vector.load %arg9[%c1_67, %c1_68, %c0_69] : memref<10x10x8xbf16, #tpu.memory_space<vmem>>, vector<8x8x8xbf16>
    %65 = vector.shape_cast %64 : vector<8x8x8xbf16> to vector<64x8xbf16>
    %c4 = arith.constant 4 : index
    %c0_70 = arith.constant 0 : index
    %c0_71 = arith.constant 0 : index
    %66 = vector.load %arg4[%c4, %c0_70, %c0_71] : memref<9x8x8xbf16, #tpu.memory_space<vmem>>, vector<1x8x8xbf16>
    %67 = vector.shape_cast %66 : vector<1x8x8xbf16> to vector<8x8xbf16>
    %cst_72 = arith.constant dense<0.000000e+00> : vector<64x8xf32>
    %68 = tpu.matmul %65, %67, %cst_72 {dimension_numbers = #tpu.dot_dimension_numbers<[1], [0], [0], [1], [0, 0, 1, 1], [], []>} : vector<64x8xbf16>, vector<8x8xbf16>, vector<64x8xf32> -> vector<64x8xf32>
    %69 = arith.addf %63, %68 : vector<64x8xf32>
    %c1_73 = arith.constant 1 : index
    %c2_74 = arith.constant 2 : index
    %c0_75 = arith.constant 0 : index
    %70 = vector.load %arg9[%c1_73, %c2_74, %c0_75] : memref<10x10x8xbf16, #tpu.memory_space<vmem>>, vector<8x8x8xbf16>
    %71 = vector.shape_cast %70 : vector<8x8x8xbf16> to vector<64x8xbf16>
    %c5 = arith.constant 5 : index
    %c0_76 = arith.constant 0 : index
    %c0_77 = arith.constant 0 : index
    %72 = vector.load %arg4[%c5, %c0_76, %c0_77] : memref<9x8x8xbf16, #tpu.memory_space<vmem>>, vector<1x8x8xbf16>
    %73 = vector.shape_cast %72 : vector<1x8x8xbf16> to vector<8x8xbf16>
    %cst_78 = arith.constant dense<0.000000e+00> : vector<64x8xf32>
    %74 = tpu.matmul %71, %73, %cst_78 {dimension_numbers = #tpu.dot_dimension_numbers<[1], [0], [0], [1], [0, 0, 1, 1], [], []>} : vector<64x8xbf16>, vector<8x8xbf16>, vector<64x8xf32> -> vector<64x8xf32>
    %75 = arith.addf %69, %74 : vector<64x8xf32>
    %c2_79 = arith.constant 2 : index
    %c0_80 = arith.constant 0 : index
    %c0_81 = arith.constant 0 : index
    %76 = vector.load %arg9[%c2_79, %c0_80, %c0_81] : memref<10x10x8xbf16, #tpu.memory_space<vmem>>, vector<8x8x8xbf16>
    %77 = vector.shape_cast %76 : vector<8x8x8xbf16> to vector<64x8xbf16>
    %c6 = arith.constant 6 : index
    %c0_82 = arith.constant 0 : index
    %c0_83 = arith.constant 0 : index
    %78 = vector.load %arg4[%c6, %c0_82, %c0_83] : memref<9x8x8xbf16, #tpu.memory_space<vmem>>, vector<1x8x8xbf16>
    %79 = vector.shape_cast %78 : vector<1x8x8xbf16> to vector<8x8xbf16>
    %cst_84 = arith.constant dense<0.000000e+00> : vector<64x8xf32>
    %80 = tpu.matmul %77, %79, %cst_84 {dimension_numbers = #tpu.dot_dimension_numbers<[1], [0], [0], [1], [0, 0, 1, 1], [], []>} : vector<64x8xbf16>, vector<8x8xbf16>, vector<64x8xf32> -> vector<64x8xf32>
    %81 = arith.addf %75, %80 : vector<64x8xf32>
    %c2_85 = arith.constant 2 : index
    %c1_86 = arith.constant 1 : index
    %c0_87 = arith.constant 0 : index
    %82 = vector.load %arg9[%c2_85, %c1_86, %c0_87] : memref<10x10x8xbf16, #tpu.memory_space<vmem>>, vector<8x8x8xbf16>
    %83 = vector.shape_cast %82 : vector<8x8x8xbf16> to vector<64x8xbf16>
    %c7 = arith.constant 7 : index
    %c0_88 = arith.constant 0 : index
    %c0_89 = arith.constant 0 : index
    %84 = vector.load %arg4[%c7, %c0_88, %c0_89] : memref<9x8x8xbf16, #tpu.memory_space<vmem>>, vector<1x8x8xbf16>
    %85 = vector.shape_cast %84 : vector<1x8x8xbf16> to vector<8x8xbf16>
    %cst_90 = arith.constant dense<0.000000e+00> : vector<64x8xf32>
    %86 = tpu.matmul %83, %85, %cst_90 {dimension_numbers = #tpu.dot_dimension_numbers<[1], [0], [0], [1], [0, 0, 1, 1], [], []>} : vector<64x8xbf16>, vector<8x8xbf16>, vector<64x8xf32> -> vector<64x8xf32>
    %87 = arith.addf %81, %86 : vector<64x8xf32>
    %c2_91 = arith.constant 2 : index
    %c2_92 = arith.constant 2 : index
    %c0_93 = arith.constant 0 : index
    %88 = vector.load %arg9[%c2_91, %c2_92, %c0_93] : memref<10x10x8xbf16, #tpu.memory_space<vmem>>, vector<8x8x8xbf16>
    %89 = vector.shape_cast %88 : vector<8x8x8xbf16> to vector<64x8xbf16>
    %c8 = arith.constant 8 : index
    %c0_94 = arith.constant 0 : index
    %c0_95 = arith.constant 0 : index
    %90 = vector.load %arg4[%c8, %c0_94, %c0_95] : memref<9x8x8xbf16, #tpu.memory_space<vmem>>, vector<1x8x8xbf16>
    %91 = vector.shape_cast %90 : vector<1x8x8xbf16> to vector<8x8xbf16>
    %cst_96 = arith.constant dense<0.000000e+00> : vector<64x8xf32>
    %92 = tpu.matmul %89, %91, %cst_96 {dimension_numbers = #tpu.dot_dimension_numbers<[1], [0], [0], [1], [0, 0, 1, 1], [], []>} : vector<64x8xbf16>, vector<8x8xbf16>, vector<64x8xf32> -> vector<64x8xf32>
    %93 = arith.addf %87, %92 : vector<64x8xf32>
    %cst_97 = arith.constant dense<0.000000e+00> : vector<8xf32>
    %94 = vector.multi_reduction <add>, %93, %cst_97 [0] : vector<64x8xf32> to vector<8xf32>
    %95 = vector.shape_cast %94 : vector<8xf32> to vector<1x8xf32>
    %c0_98 = arith.constant 0 : index
    %c0_99 = arith.constant 0 : index
    %c0_100 = arith.constant 0 : index
    %96 = vector.load %arg7[%c0_98, %c0_99, %c0_100] : memref<1x1x8xf32, #tpu.memory_space<vmem>>, vector<1x1x8xf32>
    %97 = vector.shape_cast %96 : vector<1x1x8xf32> to vector<1x8xf32>
    %98 = vector.shape_cast %95 : vector<1x8xf32> to vector<1x1x8xf32>
    tpu.vector_store %arg7[%c0_98, %c0_99, %c0_100], %98 {strides = array<i32>} : memref<1x1x8xf32, #tpu.memory_space<vmem>>, vector<1x1x8xf32>,
    %99 = arith.mulf %93, %93 : vector<64x8xf32>
    %cst_101 = arith.constant dense<0.000000e+00> : vector<8xf32>
    %100 = vector.multi_reduction <add>, %99, %cst_101 [0] : vector<64x8xf32> to vector<8xf32>
    %101 = vector.shape_cast %100 : vector<8xf32> to vector<1x8xf32>
    %c0_102 = arith.constant 0 : index
    %c0_103 = arith.constant 0 : index
    %c0_104 = arith.constant 0 : index
    %102 = vector.load %arg8[%c0_102, %c0_103, %c0_104] : memref<1x1x8xf32, #tpu.memory_space<vmem>>, vector<1x1x8xf32>
    %103 = vector.shape_cast %102 : vector<1x1x8xf32> to vector<1x8xf32>
    %104 = vector.shape_cast %101 : vector<1x8xf32> to vector<1x1x8xf32>
    tpu.vector_store %arg8[%c0_102, %c0_103, %c0_104], %104 {strides = array<i32>} : memref<1x1x8xf32, #tpu.memory_space<vmem>>, vector<1x1x8xf32>,
    %c0_105 = arith.constant 0 : index
    %c0_106 = arith.constant 0 : index
    %105 = vector.load %arg5[%c0_105, %c0_106] : memref<1x8xf32, #tpu.memory_space<vmem>>, vector<1x8xf32>
    %106 = vector.broadcast %105 : vector<1x8xf32> to vector<64x8xf32>
    %107 = arith.addf %93, %106 : vector<64x8xf32>
    %108 = vector.shape_cast %107 : vector<64x8xf32> to vector<8x8x8xf32>
    %c0_107 = arith.constant 0 : index
    %c0_108 = arith.constant 0 : index
    %c0_109 = arith.constant 0 : index
    %c0_110 = arith.constant 0 : index
    %109 = vector.load %arg6[%c0_107, %c0_108, %c0_109, %c0_110] : memref<1x8x8x8xf32, #tpu.memory_space<vmem>>, vector<1x8x8x8xf32>
    %110 = vector.shape_cast %109 : vector<1x8x8x8xf32> to vector<8x8x8xf32>
    %111 = vector.shape_cast %108 : vector<8x8x8xf32> to vector<1x8x8x8xf32>
    tpu.vector_store %arg6[%c0_107, %c0_108, %c0_109, %c0_110], %111 {strides = array<i32>} : memref<1x8x8x8xf32, #tpu.memory_space<vmem>>, vector<1x8x8x8xf32>,
    return
  }
  func.func @transform_0(%arg0: i32) -> (i32, i32, i32, i32) {
    %c0_i32 = arith.constant 0 : i32
    %c0_i32_0 = arith.constant 0 : i32
    %c0_i32_1 = arith.constant 0 : i32
    %c0_i32_2 = arith.constant 0 : i32
    return %arg0, %c0_i32, %c0_i32_0, %c0_i32_1 : i32, i32, i32, i32
  }
  func.func @transform_1(%arg0: i32) -> (i32, i32, i32) {
    %c0_i32 = arith.constant 0 : i32
    %c0_i32_0 = arith.constant 0 : i32
    %c0_i32_1 = arith.constant 0 : i32
    %c0_i32_2 = arith.constant 0 : i32
    return %c0_i32, %c0_i32_0, %c0_i32_1 : i32, i32, i32
  }
  func.func @transform_2(%arg0: i32) -> (i32, i32) {
    %c0_i32 = arith.constant 0 : i32
    %c0_i32_0 = arith.constant 0 : i32
    %c0_i32_1 = arith.constant 0 : i32
    return %c0_i32, %c0_i32_0 : i32, i32
  }
  func.func @transform_3(%arg0: i32) -> (i32, i32, i32) {
    %c0_i32 = arith.constant 0 : i32
    %c0_i32_0 = arith.constant 0 : i32
    %c0_i32_1 = arith.constant 0 : i32
    %c0_i32_2 = arith.constant 0 : i32
    return %c0_i32, %c0_i32_0, %c0_i32_1 : i32, i32, i32
  }
  func.func @transform_4(%arg0: i32) -> (i32, i32) {
    %c0_i32 = arith.constant 0 : i32
    %c0_i32_0 = arith.constant 0 : i32
    %c0_i32_1 = arith.constant 0 : i32
    return %c0_i32, %c0_i32_0 : i32, i32
  }
  func.func @transform_5(%arg0: i32) -> (i32, i32, i32, i32) {
    %c0_i32 = arith.constant 0 : i32
    %c0_i32_0 = arith.constant 0 : i32
    %c0_i32_1 = arith.constant 0 : i32
    %c0_i32_2 = arith.constant 0 : i32
    return %arg0, %c0_i32, %c0_i32_0, %c0_i32_1 : i32, i32, i32, i32
  }
  func.func @transform_6(%arg0: i32) -> (i32, i32, i32) {
    %c0_i32 = arith.constant 0 : i32
    %c0_i32_0 = arith.constant 0 : i32
    %c0_i32_1 = arith.constant 0 : i32
    return %arg0, %c0_i32, %c0_i32_0 : i32, i32, i32
  }
  func.func @transform_7(%arg0: i32) -> (i32, i32, i32) {
    %c0_i32 = arith.constant 0 : i32
    %c0_i32_0 = arith.constant 0 : i32
    %c0_i32_1 = arith.constant 0 : i32
    return %arg0, %c0_i32, %c0_i32_0 : i32, i32, i32
  }
}

module attributes {stable_mosaic.version = 11 : i64} {
  func.func @_scale_shift_kernel(%arg0: i32, %arg1: memref<128x8xf32, #tpu.memory_space<vmem>>, %arg2: memref<1x8xf32, #tpu.memory_space<vmem>>, %arg3: memref<1x8xf32, #tpu.memory_space<vmem>>, %arg4: memref<128x8xf32, #tpu.memory_space<vmem>>) attributes {dimension_semantics = [#tpu.dimension_semantics<parallel>], iteration_bounds = array<i64: 1>, scalar_prefetch = 0 : i64, scratch_operands = 0 : i64, tpu.core_type = #tpu.core_type<tc>, window_params = [{transform_indices = @transform_0, window_bounds = array<i64: 128, 8>}, {pipeline_mode = #tpu.pipeline_mode<synchronous>, transform_indices = @transform_1, window_bounds = array<i64: 1, 8>}, {pipeline_mode = #tpu.pipeline_mode<synchronous>, transform_indices = @transform_2, window_bounds = array<i64: 1, 8>}, {transform_indices = @transform_3, window_bounds = array<i64: 128, 8>}]} {
    %c0 = arith.constant 0 : index
    %c0_0 = arith.constant 0 : index
    %0 = vector.load %arg1[%c0, %c0_0] : memref<128x8xf32, #tpu.memory_space<vmem>>, vector<128x8xf32>
    %c0_1 = arith.constant 0 : index
    %c0_2 = arith.constant 0 : index
    %1 = vector.load %arg2[%c0_1, %c0_2] : memref<1x8xf32, #tpu.memory_space<vmem>>, vector<1x8xf32>
    %2 = vector.broadcast %1 : vector<1x8xf32> to vector<128x8xf32>
    %3 = arith.mulf %0, %2 : vector<128x8xf32>
    %c0_3 = arith.constant 0 : index
    %c0_4 = arith.constant 0 : index
    %4 = vector.load %arg3[%c0_3, %c0_4] : memref<1x8xf32, #tpu.memory_space<vmem>>, vector<1x8xf32>
    %5 = vector.broadcast %4 : vector<1x8xf32> to vector<128x8xf32>
    %6 = arith.addf %3, %5 : vector<128x8xf32>
    %c0_5 = arith.constant 0 : index
    %c0_6 = arith.constant 0 : index
    %7 = vector.load %arg4[%c0_5, %c0_6] : memref<128x8xf32, #tpu.memory_space<vmem>>, vector<128x8xf32>
    tpu.vector_store %arg4[%c0_5, %c0_6], %6 {strides = array<i32>} : memref<128x8xf32, #tpu.memory_space<vmem>>, vector<128x8xf32>,
    return
  }
  func.func @transform_0(%arg0: i32) -> (i32, i32) {
    %c0_i32 = arith.constant 0 : i32
    %c0_i32_0 = arith.constant 0 : i32
    return %arg0, %c0_i32 : i32, i32
  }
  func.func @transform_1(%arg0: i32) -> (i32, i32) {
    %c0_i32 = arith.constant 0 : i32
    %c0_i32_0 = arith.constant 0 : i32
    %c0_i32_1 = arith.constant 0 : i32
    return %c0_i32, %c0_i32_0 : i32, i32
  }
  func.func @transform_2(%arg0: i32) -> (i32, i32) {
    %c0_i32 = arith.constant 0 : i32
    %c0_i32_0 = arith.constant 0 : i32
    %c0_i32_1 = arith.constant 0 : i32
    return %c0_i32, %c0_i32_0 : i32, i32
  }
  func.func @transform_3(%arg0: i32) -> (i32, i32) {
    %c0_i32 = arith.constant 0 : i32
    %c0_i32_0 = arith.constant 0 : i32
    return %arg0, %c0_i32 : i32, i32
  }
}

</mosaic_0001>

<bundles_post_ra>
// kernel: encoder_block_forward.3
= control target key start
LH: loop header
LB: loop body
LE: loop exit
PB: predicated region body
PF: predicated region fallthrough
CT: control target
= control target key end

     0   :  { %vm76_vm0 = vcmask 64512   ;;  %s237_s0 = inlined_call_operand.vmem [shape: f32[128,8], index: 0, kind: input, shape index: {}]   ;;  %s238_s1 = inlined_call_operand.vmem [shape: f32[1,8], index: 1, kind: input, shape index: {}]   ;;  %s239_s2 = inlined_call_operand.vmem [shape: f32[1,8], index: 2, kind: input, shape index: {}]   ;;  %s240_s3 = inlined_call_operand.vmem [shape: f32[128,8], index: 3, kind: output, shape index: {}]  }
   0x1   :  { %v14_v0 = vld [vmem:[%s237_s0] sm:$0xff]  ;;  %v15_v4 = vld [vmem:[%s237_s0 + $0x8] sm:$0xff]  ;;  %v16_v5 = vld [vmem:[%s237_s0 + $0x10] sm:$0xff] }
   0x2   :  { %v97_v1 = vld [vmem:[%s238_s1] ss:$0 sm:$0xff]  ;;  %v17_v6 = vld [vmem:[%s237_s0 + $0x18] sm:$0xff]  ;;  %v19_v11 = vld [vmem:[%s237_s0 + $0x28] sm:$0xff] }
   0x3   :  { %v98_v2 = vld [vmem:[%s239_s2] ss:$0 sm:$0xff]  ;;  %v37_v3 = vmul.f32 %v97_v1, %v14_v0  ;;  %v38_v7 = vmul.f32 %v97_v1, %v15_v4  ;;  %v39_v8 = vmul.f32 %v97_v1, %v16_v5  ;;  %v40_v9 = vmul.f32 %v97_v1, %v17_v6  ;;  %v20_v12 = vld [vmem:[%s237_s0 + $0x30] sm:$0xff]  ;;  %v21_v17 = vld [vmem:[%s237_s0 + $0x38] sm:$0xff] }
   0x4   :  { %v18_v10 = vld [vmem:[%s237_s0 + $0x20] sm:$0xff]  ;;  %v42_v15 = vmul.f32 %v97_v1, %v19_v11  ;;  %v43_v16 = vmul.f32 %v97_v1, %v20_v12  ;;  %v23_v19 = vld [vmem:[%s237_s0 + $0x48] sm:$0xff]  ;;  %v44_v23 = vmul.f32 %v97_v1, %v21_v17  ;;  %v24_v24 = vld [vmem:[%s237_s0 + $0x50] sm:$0xff] }
   0x5   :  { %v60_v13 = vadd.f32 %v98_v2, %v37_v3  ;;  %v41_v14 = vmul.f32 %v97_v1, %v18_v10  ;;  %v22_v18 = vld [vmem:[%s237_s0 + $0x40] sm:$0xff]  ;;  %v61_v20 = vadd.f32 %v98_v2, %v38_v7  ;;  %v62_v21 = vadd.f32 %v98_v2, %v39_v8  ;;  %v25_v25 = vld [vmem:[%s237_s0 + $0x58] sm:$0xff]  ;;  %v27_v31 = vld [vmem:[%s237_s0 + $0x68] sm:$0xff] }
   0x6   :  { %v63_v22 = vadd.f32 %v98_v2, %v40_v9  ;;  %v26_v26 = vld [vmem:[%s237_s0 + $0x60] sm:$0xff]  ;;  %v65_v28 = vadd.f32 %v98_v2, %v42_v15  ;;  %v66_v29 = vadd.f32 %v98_v2, %v43_v16  ;;  %v45_v30 = vmul.f32 %v97_v1, %v22_v18  ;;  %v28_v32 = vld [vmem:[%s237_s0 + $0x70] sm:$0xff]  ;;  %v29_v33 = vld [vmem:[%s237_s0 + $0x78] sm:$0xff] }
   0x7   :  { %77 = vst.msk [vmem:[%s240_s3] sm:$0xff] %vm76_vm0, %v60_v13  ;;  %v64_v27 = vadd.f32 %v98_v2, %v41_v14  ;;  %78 = vst.msk [vmem:[%s240_s3 + $0x8] sm:$0xff] %vm76_vm0, %v61_v20  ;;  %v67_v34 = vadd.f32 %v98_v2, %v44_v23  ;;  %v46_v35 = vmul.f32 %v97_v1, %v23_v19 }
   0x8   :  { %79 = vst.msk [vmem:[%s240_s3 + $0x10] sm:$0xff] %vm76_vm0, %v62_v21  ;;  %80 = vst.msk [vmem:[%s240_s3 + $0x18] sm:$0xff] %vm76_vm0, %v63_v22  ;;  %v47_v36 = vmul.f32 %v97_v1, %v24_v24  ;;  %v48_v37 = vmul.f32 %v97_v1, %v25_v25  ;;  %v68_v38 = vadd.f32 %v98_v2, %v45_v30 }
   0x9   :  { %81 = vst.msk [vmem:[%s240_s3 + $0x20] sm:$0xff] %vm76_vm0, %v64_v27  ;;  %82 = vst.msk [vmem:[%s240_s3 + $0x28] sm:$0xff] %vm76_vm0, %v65_v28  ;;  %v49_v39 = vmul.f32 %v97_v1, %v26_v26  ;;  %v50_v40 = vmul.f32 %v97_v1, %v27_v31  ;;  %v51_v41 = vmul.f32 %v97_v1, %v28_v32 }
   0xa   :  { %83 = vst.msk [vmem:[%s240_s3 + $0x30] sm:$0xff] %vm76_vm0, %v66_v29  ;;  %84 = vst.msk [vmem:[%s240_s3 + $0x38] sm:$0xff] %vm76_vm0, %v67_v34  ;;  %v69_v42 = vadd.f32 %v98_v2, %v46_v35  ;;  %v70_v43 = vadd.f32 %v98_v2, %v47_v36  ;;  %v71_v44 = vadd.f32 %v98_v2, %v48_v37 }
   0xb   :  { %v52_v45 = vmul.f32 %v97_v1, %v29_v33  ;;  %85 = vst.msk [vmem:[%s240_s3 + $0x40] sm:$0xff] %vm76_vm0, %v68_v38  ;;  %v72_v46 = vadd.f32 %v98_v2, %v49_v39  ;;  %v73_v47 = vadd.f32 %v98_v2, %v50_v40  ;;  %v74_v48 = vadd.f32 %v98_v2, %v51_v41 }
   0xc   :  { %86 = vst.msk [vmem:[%s240_s3 + $0x48] sm:$0xff] %vm76_vm0, %v69_v42  ;;  %87 = vst.msk [vmem:[%s240_s3 + $0x50] sm:$0xff] %vm76_vm0, %v70_v43 }
   0xd   :  { %88 = vst.msk [vmem:[%s240_s3 + $0x58] sm:$0xff] %vm76_vm0, %v71_v44  ;;  %v75_v49 = vadd.f32 %v98_v2, %v52_v45  ;;  %89 = vst.msk [vmem:[%s240_s3 + $0x60] sm:$0xff] %vm76_vm0, %v72_v46 }
   0xe   :  { %90 = vst.msk [vmem:[%s240_s3 + $0x68] sm:$0xff] %vm76_vm0, %v73_v47  ;;  %91 = vst.msk [vmem:[%s240_s3 + $0x70] sm:$0xff] %vm76_vm0, %v74_v48 }
   0xf   :  { %92 = vst.msk [vmem:[%s240_s3 + $0x78] sm:$0xff] %vm76_vm0, %v75_v49 }

// kernel: encoder_block_forward.2
= control target key start
LH: loop header
LB: loop body
LE: loop exit
PB: predicated region body
PF: predicated region fallthrough
CT: control target
= control target key end

     0   :  { %s3449_s24 = smov 0   ;;  %s4120_s0 = inlined_call_operand.vmem [shape: bf16[2,9,9,16], index: 0, kind: input, shape index: {}]   ;;  %s4121_s1 = inlined_call_operand.vmem [shape: bf16[4,16,8], index: 1, kind: input, shape index: {}]   ;;  %s4122_s2 = inlined_call_operand.vmem [shape: f32[1,8], index: 2, kind: input, shape index: {}]   ;;  %s4123_s3 = inlined_call_operand.vmem [shape: bf16[9,8,8], index: 3, kind: input, shape index: {}]   ;;  %s4124_s4 = inlined_call_operand.vmem [shape: f32[1,8], index: 4, kind: input, shape index: {}]   ;;  %s4125_s5 = inlined_call_operand.vmem [shape: f32[2,8,8,8], index: 5, kind: output, shape index: {0}]   ;;  %s4126_s6 = inlined_call_operand.vmem [shape: f32[2,1,8], index: 6, kind: output, shape index: {1}]   ;;  %s4127_s7 = inlined_call_operand.vmem [shape: f32[2,1,8], index: 7, kind: output, shape index: {2}]  }
   0x1 LB: > { %s2872_s25 = sadd.s32 4294967295, %s3406_s24   ;;  %p2876_p0 = scmp.ge.s32.totalorder %s3406_s24, 1  ;;  %s3406_s24 = sphi %s3449_s24, %s18_s24  }
   0x2   : > { %p242_p1 = scmp.lt.s32.totalorder %s3406_s24, 3 }
   0x4   : > { %p243_p2 = pnand %p2876_p0, %p242_p1 }
   0x5   : > { %v3376_v0 = vld [vmem:[%s4121_s1 + $0x8] sm:$0xff] (!%p243_p2)   ;;  %p280_p3 = scmp.lt.s32.totalorder (!%p243_p2), %s2872_s25, 1  ;;  %v3463_v1 = vld [vmem:[%s4121_s1] sm:$0xff] (!%p243_p2)   ;;  %vm315_vm0 = vsmask.f32 (!%p243_p2), 3328  ;;  %vm451_vm2 = vcmask (!%p243_p2), 130048  }
   0x6   : > { %246 = sbr.rel (%p243_p2) target bundleno = 675 (0x2a3), region = 40  ;;  %3136 = vmatprep.subr.bf16.mxu0 (!%p243_p2), %v3376_v0  ;;  %vm316_vm1 = vsmask.f32 (!%p243_p2), 7440  ;;  %vm1016_vm4 = vcmask (!%p243_p2), 60416   ;;  %vm1018_vm5 = vcmask (!%p243_p2), 57344   ;;  %vm1349_vm6 = vcmask (!%p243_p2), 1043456  }
   0x7   : > { %3137 = vmatpush3.bf16.msra.mxu0 (!%p243_p2), %v3376_v0  ;;  %vm3503_vm3 = vmor (!%p243_p2), %vm315_vm0, %vm316_vm1  ;;  %vm1140_vm7 = vsmask.f32 (!%p243_p2), 7938  ;;  %vm1146_vm8 = vsmask.f32 (!%p243_p2), 256  ;;  %vm1542_vm11 = vcmask (!%p243_p2), 1042432   ;;  %vm1543_vm12 = vcmask (!%p243_p2), 1046532  }
   0x8   : > { %3146 = vmatprep.subr.bf16.mxu0 (!%p243_p2), %v3463_v1  ;;  %vm3686_vm9 = vmand (!%p243_p2), %vm1016_vm4, %vm1140_vm7  ;;  %vm1336_vm13 = vcmask (!%p243_p2), 64512  }
   0x9   : > { %vm3693_vm10 = vmand (!%p243_p2), %vm1018_vm5, %vm1146_vm8 }
   0xa   : > { %vm3798_vm14 = vmor (!%p243_p2), %vm1542_vm11, %vm1543_vm12 }
   0xd   : > { %s4137_s25 = smov (!%p280_p3, %s2872_s25), 1 }
   0xe   : > { %s3366_s30 = smul.u32 72, %s4137_s25  ;;  %s3062_s14 = sshll.u32 %s4137_s25, 6 }
   0xf   : > { %s4073_s19 = scalar_lea.vmem %s4125_s5, %s3062_s14  ;;  %s292_s22 = scalar_lea.vmem %s4126_s6, %s4137_s25 }
  0x10   : > { %s3472_s10 = scalar_lea.vmem %s4120_s0, %s3366_s30  ;;  %s295_s27 = scalar_lea.vmem %s4127_s7, %s4137_s25 }
  0x11   : > { %v3475_v2 = vld [vmem:[%s3472_s10] sm:$0xf]  ;;  %v3478_v3 = vld [vmem:[%s3472_s10 + $0x8] sm:$0xf]  ;;  %v307_v4 = vld [vmem:[%s3472_s10 + $0x4] sm:$0x1] }
  0x12   : > { %v308_v5 = vld [vmem:[%s3472_s10 + $0xc] sm:$0x1]  ;;  %v319_v6 = vshrl.u32 %v3475_v2, 16  ;;  %v322_v7 = vshll.u32 %v3475_v2, 16  ;;  %v328_v8 = vshll.u32 %v307_v4, 16  ;;  %v333_v9 = vshrl.u32 %v3478_v3, 16 }
  0x13   : > { %v336_v10 = vshll.u32 %v3478_v3, 16  ;;  %v342_v11 = vshll.u32 %v308_v5, 16  ;;  %v3487_v12 = vld [vmem:[%s3472_s10 + $0x10] sm:$0xf]  ;;  %v3490_v13 = vld [vmem:[%s3472_s10 + $0x18] sm:$0xf] }
  0x14   : > { %v321_v14 = vrot.slane %v319_v6, 4  ;;  %v324_v15 = vrot.slane %v322_v7, 5  ;;  %v330_v16 = vrot.slane %v328_v8, 5  ;;  %v335_v17 = vrot.slane %v333_v9, 4  ;;  %v309_v18 = vld [vmem:[%s3472_s10 + $0x14] sm:$0x1] }
  0x15   : > { %v338_v19 = vrot.slane %v336_v10, 5  ;;  %v344_v20 = vrot.slane %v342_v11, 5  ;;  %v310_v21 = vld [vmem:[%s3472_s10 + $0x1c] sm:$0x1]  ;;  %v347_v22 = vshrl.u32 %v3487_v12, 16  ;;  %v350_v23 = vshll.u32 %v3487_v12, 16 }
  0x16   : > { %v325_v24 = vor.u32 %v324_v15, %v321_v14  ;;  %v356_v25 = vshll.u32 %v309_v18, 16  ;;  %v361_v26 = vshrl.u32 %v3490_v13, 16  ;;  %v364_v27 = vshll.u32 %v3490_v13, 16  ;;  %v3499_v28 = vld [vmem:[%s3472_s10 + $0x20] sm:$0xf]  ;;  %v3379_v11 = vld [vmem:[%s4121_s1 + $0x10] sm:$0xff]  }
  0x17   : > { %v339_v30 = vor.u32 %v338_v19, %v335_v17  ;;  %v349_v31 = vrot.slane %v347_v22, 4  ;;  %v352_v32 = vrot.slane %v350_v23, 5  ;;  %v370_v33 = vshll.u32 %v310_v21, 16  ;;  %v3508_v34 = vld [vmem:[%s3472_s10 + $0x28] sm:$0xf] }
  0x18   : > { %v326_v35 = vrot.slane %v325_v24, 4  ;;  %v358_v36 = vrot.slane %v356_v25, 5  ;;  %v363_v37 = vrot.slane %v361_v26, 4  ;;  %v366_v38 = vrot.slane %v364_v27, 5  ;;  %v311_v39 = vld [vmem:[%s3472_s10 + $0x24] sm:$0x1] }
  0x19   : > { %v340_v40 = vrot.slane %v339_v30, 4  ;;  %v353_v41 = vor.u32 %v352_v32, %v349_v31  ;;  %v372_v42 = vrot.slane %v370_v33, 5  ;;  %v375_v43 = vshrl.u32 %v3499_v28, 16  ;;  %v312_v46 = vld [vmem:[%s3472_s10 + $0x2c] sm:$0x1] }
  0x1a   : > { %v331_v44 = vsel %vm3503_vm3, %v326_v35, %v330_v16  ;;  %v367_v45 = vor.u32 %v366_v38, %v363_v37  ;;  %v378_v47 = vshll.u32 %v3499_v28, 16  ;;  %v384_v48 = vshll.u32 %v311_v39, 16  ;;  %v3520_v53 = vld [vmem:[%s3472_s10 + $0x30] sm:$0xf]  ;;  %v3523_v57 = vld [vmem:[%s3472_s10 + $0x38] sm:$0xf] }
  0x1b   : > { %v345_v49 = vsel %vm3503_vm3, %v340_v40, %v344_v20  ;;  %v354_v50 = vrot.slane %v353_v41, 4  ;;  %v377_v51 = vrot.slane %v375_v43, 4  ;;  %v389_v52 = vshrl.u32 %v3508_v34, 16  ;;  %v313_v58 = vld [vmem:[%s3472_s10 + $0x34] sm:$0x1] }
  0x1c   : > { %v2882_v54 = vcombine.low %v331_v44, %v345_v49  ;;  %v368_v55 = vrot.slane %v367_v45, 4  ;;  %v380_v56 = vrot.slane %v378_v47, 5  ;;  %v392_v61 = vshll.u32 %v3508_v34, 16  ;;  %v314_v4 = vld [vmem:[%s3472_s10 + $0x3c] sm:$0x1] }
  0x1d   : > { %v359_v59 = vsel %vm3503_vm3, %v354_v50, %v358_v36  ;;  %v391_v60 = vrot.slane %v389_v52, 4  ;;  %v398_v62 = vshll.u32 %v312_v46, 16  ;;  %v403_v5 = vshrl.u32 %v3520_v53, 16  ;;  %v2919_v41 = vld [vmem:[%s3472_s10 + $0x8] sm:$0xf]  ;;  %v3384_v44 = vld [vmem:[%s4121_s1 + $0x18] sm:$0xff]  }
  0x1e   : > { %3138 = vmatprep.mubr.msk.bf16.mxu0 %vm451_vm2, %v2882_v54  ;;  %v373_v63 = vsel %vm3503_vm3, %v368_v55, %v372_v42  ;;  %v381_v0 = vor.u32 %v380_v56, %v377_v51  ;;  %v406_v6 = vshll.u32 %v3520_v53, 16  ;;  %v386_v8 = vrot.slane %v384_v48, 5  ;;  %v2921_v43 = vld [vmem:[%s3472_s10 + $0x10] sm:$0xf]  ;;  %v2922_v47 = vld [vmem:[%s3472_s10 + $0x14] sm:$0x1] }
  0x1f   : > { %v2883_v7 = vcombine.low %v359_v59, %v373_v63  ;;  %v394_v9 = vrot.slane %v392_v61, 5  ;;  %v412_v10 = vshll.u32 %v313_v58, 16  ;;  %v405_v15 = vrot.slane %v403_v5, 4  ;;  %v2923_v50 = vld [vmem:[%s3472_s10 + $0x18] sm:$0xf] }
  0x20   : > { %v382_v14 = vrot.slane %v381_v0, 4  ;;  %v408_v16 = vrot.slane %v406_v6, 5  ;;  %v417_v17 = vshrl.u32 %v3523_v57, 16  ;;  %v400_v19 = vrot.slane %v398_v62, 5  ;;  %v3383_v51 = vld [vmem:[%s3472_s10 + $0x8] ss:$8 sps:$4 sm:$0xff]  }
  0x21   : > { %3139 = vmatmul.mubr.msk.bf16.vlgmr.msra.gmra.mrb[0].mxu0 %vm451_vm2, %v2883_v7  ;;  %v395_v18 = vor.u32 %v394_v9, %v391_v60  ;;  %v420_v20 = vshll.u32 %v3523_v57, 16  ;;  %v426_v21 = vshll.u32 %v314_v4, 16  ;;  %v414_v26 = vrot.slane %v412_v10, 5  ;;  %v2925_v52 = vld [vmem:[%s3472_s10 + $0x20] sm:$0xf] }
  0x22   : > { %3147 = vmatpush3.bf16.msra.mxu0 %v3463_v1  ;;  %v409_v22 = vor.u32 %v408_v16, %v405_v15  ;;  %v419_v23 = vrot.slane %v417_v17, 4  ;;  %v387_v24 = vsel %vm3503_vm3, %v382_v14, %v386_v8  ;;  %v2891_v38 = vcombine.low %v3475_v2, %v3478_v3  ;;  %v2927_v59 = vld [vmem:[%s3472_s10 + $0x28] sm:$0xf]  ;;  %v2929_v60 = vld [vmem:[%s3472_s10 + $0x30] sm:$0xf] }
  0x23   : > { %v396_v25 = vrot.slane %v395_v18, 4  ;;  %v422_v27 = vrot.slane %v420_v20, 5  ;;  %3156 = vmatprep.subr.bf16.mxu0 %v3379_v11  ;;  %v428_v33 = vrot.slane %v426_v21, 5  ;;  %v2892_v40 = vcombine.low %v3487_v12, %v3490_v13  ;;  %v2920_v12 = vld [vmem:[%s3472_s10 + $0xc] sm:$0x1] }
  0x24   : > { %v410_v30 = vrot.slane %v409_v22, 4  ;;  %v2893_v42 = vcombine.low %v3499_v28, %v3508_v34  ;;  %v772_v2 = vshrl.u32 %v2919_v41, 16  ;;  %v775_v3 = vshll.u32 %v2919_v41, 16  ;;  %v3385_v63 = vld [vmem:[%s3472_s10 + $0x18] ss:$8 sps:$4 sm:$0xff]  }
  0x25   : > { %v401_v31 = vsel %vm3503_vm3, %v396_v25, %v400_v19  ;;  %v423_v32 = vor.u32 %v422_v27, %v419_v23  ;;  %v786_v45 = vshrl.u32 %v2921_v43, 16  ;;  %v789_v46 = vshll.u32 %v2921_v43, 16  ;;  %v2924_v10 = vld [vmem:[%s3472_s10 + $0x1c] sm:$0x1]  ;;  %v2926_v15 = vld [vmem:[%s3472_s10 + $0x24] sm:$0x1] }
  0x26   : > { %v2884_v35 = vcombine.low %v387_v24, %v401_v31  ;;  %v415_v1 = vsel %vm3503_vm3, %v410_v30, %v414_v26  ;;  %v774_v13 = vrot.slane %v772_v2, 4  ;;  %v777_v28 = vrot.slane %v775_v3, 5  ;;  %v3386_v19 = vld [vmem:[%s3472_s10 + $0x28] ss:$8 sps:$4 sm:$0xff]   ;;  %v2931_v20 = vld [vmem:[%s3472_s10 + $0x38] sm:$0xf] }
  0x27   : > { %v424_v36 = vrot.slane %v423_v32, 4  ;;  %v2894_v34 = vcombine.low %v3520_v53, %v3523_v57  ;;  %v788_v48 = vrot.slane %v786_v45, 4  ;;  %v791_v49 = vrot.slane %v789_v46, 5  ;;  %v2933_v25 = vld [vmem:[%s3472_s10 + $0x40] sm:$0xf] }
  0x28   : > { %3142 = vmatprep.mubr.msk.bf16.mxu0 %vm451_vm2, %v2884_v35  ;;  %v781_v54 = vshll.u32 %v2920_v12, 16  ;;  %v778_v55 = vor.u32 %v777_v28, %v774_v13  ;;  %v795_v56 = vshll.u32 %v2922_v47, 16  ;;  %v800_v58 = vshrl.u32 %v2923_v50, 16  ;;  %v2928_v30 = vld [vmem:[%s3472_s10 + $0x2c] sm:$0x1] }
  0x29   : > { %v429_v37 = vsel %vm3503_vm3, %v424_v36, %v428_v33  ;;  %v792_v61 = vor.u32 %v791_v49, %v788_v48  ;;  %v803_v62 = vshll.u32 %v2923_v50, 16  ;;  %v814_v53 = vshrl.u32 %v2925_v52, 16  ;;  %v2930_v31 = vld [vmem:[%s3472_s10 + $0x34] sm:$0x1]  ;;  %v3387_v3 = vld [vmem:[%s3472_s10 + $0x38] ss:$8 sps:$4 sm:$0xff]  }
  0x2a   : > { %v2885_v39 = vcombine.low %v415_v1, %v429_v37  ;;  %v817_v57 = vshll.u32 %v2925_v52, 16  ;;  %v828_v0 = vshrl.u32 %v2927_v59, 16  ;;  %v831_v4 = vshll.u32 %v2927_v59, 16  ;;  %v2932_v28 = vld [vmem:[%s3472_s10 + $0x3c] sm:$0x1] }
  0x2b   : > { %v842_v5 = vshrl.u32 %v2929_v60, 16  ;;  %v845_v6 = vshll.u32 %v2929_v60, 16  ;;  %v779_v7 = vrot.slane %v778_v55, 4  ;;  %v783_v8 = vrot.slane %v781_v54, 5  ;;  %v2934_v54 = vld [vmem:[%s3472_s10 + $0x44] sm:$0x1] }
  0x2c   : > { %3143 = vmatmul.mubr.msk.bf16.gmra.mrb[4].mxu0 %vm451_vm2, %v2885_v39  ;;  %v797_v9 = vrot.slane %v795_v56, 5  ;;  %v793_v14 = vrot.slane %v792_v61, 4  ;;  %v805_v16 = vrot.slane %v803_v62, 5  ;;  %v816_v17 = vrot.slane %v814_v53, 4 }
  0x2d   : > { %3148 = vmatprep.mubr.msk.bf16.mxu0 %vm451_vm2, %v2891_v38  ;;  %v819_v18 = vrot.slane %v817_v57, 5  ;;  %v830_v21 = vrot.slane %v828_v0, 4  ;;  %v833_v22 = vrot.slane %v831_v4, 5  ;;  %v844_v23 = vrot.slane %v842_v5, 4 }
  0x2e   : > { %v847_v24 = vrot.slane %v845_v6, 5  ;;  %v809_v26 = vshll.u32 %v2924_v10, 16  ;;  %v823_v27 = vshll.u32 %v2926_v15, 16  ;;  %v784_v32 = vsel %vm3503_vm3, %v779_v7, %v783_v8 }
  0x2f   : > { %v798_v33 = vsel %vm3503_vm3, %v793_v14, %v797_v9  ;;  %v820_v1 = vor.u32 %v819_v18, %v816_v17  ;;  %v856_v36 = vshrl.u32 %v2931_v20, 16  ;;  %v859_v37 = vshll.u32 %v2931_v20, 16  ;;  %v3637_v14 = vld [vmem:[%s4123_s3 + $0x8] sm:$0xf]  ;;  %v3651_v17 = vld [vmem:[%s4123_s3 + $0xc] sm:$0xf] }
  0x30   : > { %v870_v38 = vshrl.u32 %v2933_v25, 16  ;;  %v873_v39 = vshll.u32 %v2933_v25, 16  ;;  %v837_v41 = vshll.u32 %v2928_v30, 16  ;;  %v851_v43 = vshll.u32 %v2930_v31, 16  ;;  %3359 = vmatprep.subr.msk.bf16.mxu1 %vm1349_vm6, %v3637_v14  ;;  %v3658_v18 = vld [vmem:[%s4123_s3] sm:$0xf] }
  0x31   : > { %v811_v2 = vrot.slane %v809_v26, 5  ;;  %v2937_v45 = vcombine.low %v784_v32, %v798_v33  ;;  %v821_v12 = vrot.slane %v820_v1, 4  ;;  %v825_v13 = vrot.slane %v823_v27, 5  ;;  %v3667_v20 = vld [vmem:[%s4122_s2] ss:$0 sm:$0xff] }
  0x32   : > { %v872_v47 = vrot.slane %v870_v38, 4  ;;  %v875_v48 = vrot.slane %v873_v39, 5  ;;  %v839_v50 = vrot.slane %v837_v41, 5  ;;  %v853_v52 = vrot.slane %v851_v43, 5 }
  0x33   : > { %v865_v56 = vshll.u32 %v2932_v28, 16  ;;  %v879_v61 = vshll.u32 %v2934_v54, 16  ;;  %v3408_v10 = vmov 0  }
  0x34   : > { %3149 = vmatmul.mubr.msk.bf16.vlgmr.msra.gmra.mrb[0].mxu0 %vm451_vm2, %v2892_v40  ;;  %v834_v40 = vor.u32 %v833_v22, %v830_v21  ;;  %v876_v60 = vor.u32 %v875_v48, %v872_v47  ;;  %1024 = vst.msk [vmem:[#allocation2 + $0x18] sm:$0xf] %vm1016_vm4, %v3408_v10  ;;  %1017 = vst.msk [vmem:[#allocation2] sm:$0xf] %vm1016_vm4, %v3408_v10 }
  0x35   : > { %3157 = vmatpush3.bf16.msra.mxu0 %v3379_v11  ;;  %3152 = vmatprep.mubr.msk.bf16.mxu0 %vm451_vm2, %v2893_v42  ;;  %v802_v11 = vrot.slane %v800_v58, 4  ;;  %v848_v42 = vor.u32 %v847_v24, %v844_v23  ;;  %v826_v58 = vsel %vm3503_vm3, %v821_v12, %v825_v13  ;;  %v881_v6 = vrot.slane %v879_v61, 5  ;;  %1025 = vst.msk [vmem:[#allocation2 + $0x1c] sm:$0x1] %vm1018_vm5, %v3408_v10 }
  0x36   : > { %3166 = vmatprep.subr.bf16.mxu0 %v3384_v44  ;;  %v835_v49 = vrot.slane %v834_v40, 4  ;;  %v877_v5 = vrot.slane %v876_v60, 4  ;;  %1019 = vst.msk [vmem:[#allocation2 + $0x4] sm:$0x1] %vm1018_vm5, %v3408_v10  ;;  %1021 = vst.msk [vmem:[#allocation2 + $0xc] sm:$0x1] %vm1018_vm5, %v3408_v10 }
  0x37   : > { %v806_v35 = vor.u32 %v805_v16, %v802_v11  ;;  %1020 = vst.msk [vmem:[#allocation2 + $0x8] sm:$0xf] %vm1016_vm4, %v3408_v10  ;;  %1022 = vst.msk [vmem:[#allocation2 + $0x10] sm:$0xf] %vm1016_vm4, %v3408_v10  ;;  %v2955_v11 = vld [vmem:[%s4123_s3 + $0x4] sm:$0xf] }
  0x38   : > { %v840_v62 = vsel %vm3503_vm3, %v835_v49, %v839_v50  ;;  %v882_v8 = vsel %vm3503_vm3, %v877_v5, %v881_v6  ;;  %1023 = vst.msk [vmem:[#allocation2 + $0x14] sm:$0x1] %vm1018_vm5, %v3408_v10  ;;  %1027 = vst.msk [vmem:[#allocation2 + $0x24] sm:$0x1] %vm1018_vm5, %v3408_v10  ;;  %v1351_v15 = vsel %vm1349_vm6, %v2955_v11, 0  ;;  %v3645_v16 = vsel %vm1349_vm6, %v3637_v14, 0 }
  0x39   : > { %v807_v46 = vrot.slane %v806_v35, 4  ;;  %1026 = vst.msk [vmem:[#allocation2 + $0x20] sm:$0xf] %vm1016_vm4, %v3408_v10  ;;  %1028 = vst.msk [vmem:[#allocation2 + $0x28] sm:$0xf] %vm1016_vm4, %v3408_v10  ;;  %3267 = vmatpush3.bf16.msra.mxu1 %v3645_v16 }
  0x3a   : > { %1029 = vst.msk [vmem:[#allocation2 + $0x2c] sm:$0x1] %vm1018_vm5, %v3408_v10  ;;  %1031 = vst.msk [vmem:[#allocation2 + $0x34] sm:$0x1] %vm1018_vm5, %v3408_v10  ;;  %3360 = vmatprep.subr.msk.bf16.mxu1 %vm1349_vm6, %v3651_v17 }
  0x3b   : > { %v812_v55 = vsel %vm3503_vm3, %v807_v46, %v811_v2  ;;  %1030 = vst.msk [vmem:[#allocation2 + $0x30] sm:$0xf] %vm1016_vm4, %v3408_v10  ;;  %1032 = vst.msk [vmem:[#allocation2 + $0x38] sm:$0xf] %vm1016_vm4, %v3408_v10  ;;  %v1157_v46 = vld [vmem:[#allocation2 + $0x18] sm:$0xf] }
  0x3c   : > { %3153 = vmatmul.mubr.msk.bf16.gmra.mrb[4].mxu0 %vm451_vm2, %v2894_v34  ;;  %v861_v34 = vrot.slane %v859_v37, 5  ;;  %v2938_v57 = vcombine.low %v812_v55, %v826_v58  ;;  %1033 = vst.msk [vmem:[#allocation2 + $0x3c] sm:$0x1] %vm1018_vm5, %v3408_v10  ;;  %1035 = vst.msk [vmem:[#allocation2 + $0x44] sm:$0x1] %vm1018_vm5, %v3408_v10 }
  0x3d   : > { %3158 = vmatprep.mubr.msk.bf16.mxu0 %vm451_vm2, %v3383_v51  ;;  %v849_v51 = vrot.slane %v848_v42, 4  ;;  %1034 = vst.msk [vmem:[#allocation2 + $0x40] sm:$0xf] %vm1016_vm4, %v3408_v10  ;;  %1036 = vst.msk [vmem:[#allocation2 + $0x48] sm:$0xf] %vm1016_vm4, %v3408_v10 }
  0x3e   : > { %1037 = vst.msk [vmem:[#allocation2 + $0x4c] sm:$0x1] %vm1018_vm5, %v3408_v10  ;;  %v3679_v41 = vld [vmem:[#allocation2 + $0x4] sm:$0x1]  ;;  %v1160_v12 = vld [vmem:[#allocation2 + $0x1c] sm:$0x1] }
  0x3f   : > { %v854_v53 = vsel %vm3503_vm3, %v849_v51, %v853_v52  ;;  %v1142_v49 = vld [vmem:[#allocation2 + $0x8] sm:$0xf]  ;;  %v1148_v58 = vld [vmem:[#allocation2 + $0xc] sm:$0x1] }
  0x40   : > { %v2939_v0 = vcombine.low %v840_v62, %v854_v53 }
  0x44   : > { %3159 = vmatmul.mubr.msk.bf16.vlgmr.msra.gmra.mrb[0].mxu0 %vm451_vm2, %v3385_v63  ;;  %v867_v63 = vrot.slane %v865_v56, 5 }
  0x45   : > { %3167 = vmatpush3.bf16.msra.mxu0 %v3384_v44  ;;  %3162 = vmatprep.mubr.msk.bf16.mxu0 %vm451_vm2, %v3386_v19  ;;  %v858_v44 = vrot.slane %v856_v36, 4  ;;  %v3662_v19 = vld [vmem:[#allocation2] sm:$0xf] }
  0x46   : > { %3356 = vmatprep.subr.msk.bf16.mxu0 %vm1349_vm6, %v2955_v11  ;;  %v1211_v21 = vshrl.u32 %v3662_v19, 16  ;;  %v1214_v22 = vshll.u32 %v3662_v19, 16 }
  0x47   : > { %v862_v59 = vor.u32 %v861_v34, %v858_v44 }
  0x48   : > { %v3674_v33 = vrot.slane %v1211_v21, 4  ;;  %v3676_v35 = vrot.slane %v1214_v22, 5 }
  0x49   : > { %v863_v4 = vrot.slane %v862_v59, 4 }
  0x4a   : > { %v1217_v2 = vor.u32 %v3676_v35, %v3674_v33 }
  0x4b   : > { %v868_v7 = vsel %vm3503_vm3, %v863_v4, %v867_v63 }
  0x4c   : > { %3163 = vmatmul.mubr.msk.bf16.gmra.mrb[4].mxu0 %vm451_vm2, %v3387_v3  ;;  %v2940_v9 = vcombine.low %v868_v7, %v882_v8  ;;  %v1220_v3 = vshll.u32 %v3679_v41, 16  ;;  %v1166_v8 = vld [vmem:[#allocation2 + $0x24] sm:$0x1] }
  0x4d   : > { %3168 = vmatprep.mubr.msk.bf16.mxu0 %vm451_vm2, %v2937_v45 }
  0x54   : > { %3169 = vmatmul.mubr.msk.bf16.vlgmr.msra.gmra.mrb[0].mxu0 %vm451_vm2, %v2938_v57 }
  0x55   : > { %3172 = vmatprep.mubr.msk.bf16.mxu0 %vm451_vm2, %v2939_v0  ;;  %3177 = vmatpush3.bf16.msra.mxu0 %v1351_v15  ;;  %v1163_v0 = vld [vmem:[#allocation2 + $0x20] sm:$0xf] }
  0x56   : > { %3357 = vmatprep.subr.msk.bf16.mxu0 %vm1349_vm6, %v3658_v18 }
  0x5c   : > { %3173 = vmatmul.mubr.msk.bf16.gmra.mrb[4].mxu0 %vm451_vm2, %v2940_v9 }
 0x127   : > { %v3170_v23 = vpop.f32.mrb[0].mxu0 }
 0x128   : > { %v998_v24 = vadd.f32 %v3170_v23, %v3667_v20  ;;  %v950_v25 = vpop.f32.mrb[1].mxu0  ;;  %v1151_v23 = vld [vmem:[#allocation2 + $0x10] sm:$0xf] }
 0x129   : > { %v996_v26 = vadd.f32 %v3667_v20, %v950_v25  ;;  %v3171_v27 = vpop.f32.mrb[2].mxu0 }
 0x12a   : > { %v1006_v30 = vmax.f32 %v998_v24, 0.0  ;;  %v999_v31 = vadd.f32 %v3171_v27, %v3667_v20  ;;  %v953_v32 = vpop.f32.mrb[3].mxu0  ;;  %v1154_v24 = vld [vmem:[#allocation2 + $0x14] sm:$0x1] }
 0x12b   : > { %v1004_v1 = vmax.f32 %v996_v26, 0.0  ;;  %v997_v36 = vadd.f32 %v3667_v20, %v953_v32 }
 0x12c   : > { %v3065_v37 = vpack.c.bf16 %v1006_v30, %v1006_v30  ;;  %v1007_v38 = vmax.f32 %v999_v31, 0.0 }
 0x12d   : > { %v3063_v39 = vpack.c.bf16 %v1004_v1, %v1004_v1  ;;  %v1005_v40 = vmax.f32 %v997_v36, 0.0 }
 0x12e   : > { %v1075_v42 = vshrl.u32 %v3065_v37, 16  ;;  %v3066_v43 = vpack.c.bf16 %v1007_v38, %v1007_v38  ;;  %v1078_v45 = vshll.u32 %v3065_v37, 16 }
 0x12f   : > { %v1059_v13 = vshrl.u32 %v3063_v39, 16  ;;  %v1062_v28 = vshll.u32 %v3063_v39, 16  ;;  %v3064_v44 = vpack.c.bf16 %v1005_v40, %v1005_v40  ;;  %v3174_v34 = vpop.f32.mrb[4].mxu0 }
 0x130   : > { %v1077_v47 = vrot.slane %v1075_v42, 7  ;;  %v1083_v50 = vshrl.u32 %v3066_v43, 16  ;;  %v1086_v51 = vshll.u32 %v3066_v43, 16  ;;  %v1002_v52 = vadd.f32 %v3174_v34, %v3667_v20  ;;  %v966_v54 = vpop.f32.mrb[5].mxu0 }
 0x131   : > { %v1061_v56 = vrot.slane %v1059_v13, 7  ;;  %v1067_v59 = vshrl.u32 %v3064_v44, 16  ;;  %v1070_v60 = vshll.u32 %v3064_v44, 16  ;;  %v1000_v61 = vadd.f32 %v3667_v20, %v966_v54  ;;  %v3175_v62 = vpop.f32.mrb[6].mxu0 }
 0x132   : > { %v1080_v53 = vor.u32 %v1078_v45, %v1077_v47  ;;  %v1081_v57 = vrot.slane %v1077_v47, 4  ;;  %v1085_v63 = vrot.slane %v1083_v50, 7  ;;  %v1010_v4 = vmax.f32 %v1002_v52, 0.0  ;;  %v969_v5 = vpop.f32.mrb[7].mxu0  ;;  %v3716_v45 = vld [vmem:[#allocation2] sm:$0xe] }
 0x133   : > { %v1064_v6 = vor.u32 %v1062_v28, %v1061_v56  ;;  %v1065_v7 = vrot.slane %v1061_v56, 4  ;;  %v1069_v9 = vrot.slane %v1067_v59, 7  ;;  %v1008_v10 = vmax.f32 %v1000_v61, 0.0  ;;  %v1184_v47 = vld [vmem:[#allocation2 + $0x3c] sm:$0x1] }
 0x134   : > { %v1158_v11 = vsel %vm3686_vm9, %v1080_v53, %v1157_v46  ;;  %v1161_v15 = vsel %vm3693_vm10, %v1081_v57, %v1160_v12  ;;  %v1088_v21 = vor.u32 %v1086_v51, %v1085_v63  ;;  %v1089_v22 = vrot.slane %v1085_v63, 4  ;;  %v1181_v46 = vld [vmem:[#allocation2 + $0x38] sm:$0xf]  ;;  %v1169_v51 = vld [vmem:[#allocation2 + $0x28] sm:$0xf] }
 0x135   : > { %1159 = vst [vmem:[#allocation2 + $0x18] sm:$0xf] %v1158_v11  ;;  %1162 = vst [vmem:[#allocation2 + $0x1c] sm:$0x1] %v1161_v15  ;;  %v1143_v25 = vsel %vm3686_vm9, %v1064_v6, %v1142_v49  ;;  %v1149_v26 = vsel %vm3693_vm10, %v1065_v7, %v1148_v58  ;;  %v1072_v27 = vor.u32 %v1070_v60, %v1069_v9  ;;  %v1073_v30 = vrot.slane %v1069_v9, 4 }
 0x136   : > { %1144 = vst [vmem:[#allocation2 + $0x8] sm:$0xf] %v1143_v25  ;;  %1150 = vst [vmem:[#allocation2 + $0xc] sm:$0x1] %v1149_v26  ;;  %v1164_v31 = vsel %vm3686_vm9, %v1088_v21, %v1163_v0  ;;  %v1167_v32 = vsel %vm3693_vm10, %v1089_v22, %v1166_v8  ;;  %v3069_v1 = vpack.c.bf16 %v1010_v4, %v1010_v4  ;;  %v3721_v28 = vrot.slane %v1217_v2, 4 }
 0x137   : > { %v3067_v36 = vpack.c.bf16 %v1008_v10, %v1008_v10  ;;  %1165 = vst [vmem:[#allocation2 + $0x20] sm:$0xf] %v1164_v31  ;;  %1168 = vst [vmem:[#allocation2 + $0x24] sm:$0x1] %v1167_v32  ;;  %v1152_v37 = vsel %vm3686_vm9, %v1072_v27, %v1151_v23  ;;  %v1155_v38 = vsel %vm3693_vm10, %v1073_v30, %v1154_v24  ;;  %v3725_v44 = vrot.slane %v1220_v3, 5 }
 0x138   : > { %v1003_v39 = vadd.f32 %v3175_v62, %v3667_v20  ;;  %v1001_v40 = vadd.f32 %v3667_v20, %v969_v5  ;;  %1153 = vst [vmem:[#allocation2 + $0x10] sm:$0xf] %v1152_v37  ;;  %1156 = vst [vmem:[#allocation2 + $0x14] sm:$0x1] %v1155_v38  ;;  %v1107_v42 = vshrl.u32 %v3069_v1, 16  ;;  %v1110_v20 = vshll.u32 %v3069_v1, 16 }
 0x139   : > { %v1091_v43 = vshrl.u32 %v3067_v36, 16  ;;  %v1094_v50 = vshll.u32 %v3067_v36, 16  ;;  %v1172_v52 = vld [vmem:[#allocation2 + $0x2c] sm:$0x1]  ;;  %v3729_v58 = vsel %vm1349_vm6, %v3651_v17, 0  ;;  %v2972_v33 = vrot.slane %v3716_v45, 9 }
 0x13a   : > { %v1011_v12 = vmax.f32 %v1003_v39, 0.0  ;;  %v1009_v13 = vmax.f32 %v1001_v40, 0.0  ;;  %v1109_v34 = vrot.slane %v1107_v42, 7  ;;  %v1187_v6 = vld [vmem:[#allocation2 + $0x40] sm:$0xf]  ;;  %v1547_v42 = vrot.slane %v3679_v41, 5 }
 0x13b   : > { %v1093_v49 = vrot.slane %v1091_v43, 7  ;;  %v1190_v7 = vld [vmem:[#allocation2 + $0x44] sm:$0x1]  ;;  %v1175_v8 = vld [vmem:[#allocation2 + $0x30] sm:$0xf] }
 0x13c   : > { %v3070_v54 = vpack.c.bf16 %v1011_v12, %v1011_v12  ;;  %v3068_v56 = vpack.c.bf16 %v1009_v13, %v1009_v13  ;;  %v1112_v35 = vor.u32 %v1110_v20, %v1109_v34  ;;  %v1113_v2 = vrot.slane %v1109_v34, 4  ;;  %v3732_v60 = vld [vmem:[#allocation2 + $0x18] sm:$0xf]  ;;  %v1178_v9 = vld [vmem:[#allocation2 + $0x34] sm:$0x1] }
 0x13d   : > { %v1096_v59 = vor.u32 %v1094_v50, %v1093_v49  ;;  %v1097_v3 = vrot.slane %v1093_v49, 4  ;;  %v3734_v63 = vld [vmem:[#allocation2 + $0x8] sm:$0xf]  ;;  %v3744_v10 = vld [vmem:[#allocation2 + $0xc] sm:$0x1]  ;;  %v1253_v30 = vshrl.u32 %v3732_v60, 16 }
 0x13e   : > { %v1115_v61 = vshrl.u32 %v3070_v54, 16  ;;  %v1118_v62 = vshll.u32 %v3070_v54, 16  ;;  %v1099_v53 = vshrl.u32 %v3068_v56, 16  ;;  %v1102_v57 = vshll.u32 %v3068_v56, 16  ;;  %v3756_v39 = vld [vmem:[#allocation2 + $0x1c] sm:$0x1] }
 0x13f   : > { %v1182_v0 = vsel %vm3686_vm9, %v1112_v35, %v1181_v46  ;;  %v1185_v17 = vsel %vm3693_vm10, %v1113_v2, %v1184_v47  ;;  %v1170_v4 = vsel %vm3686_vm9, %v1096_v59, %v1169_v51  ;;  %v1173_v5 = vsel %vm3693_vm10, %v1097_v3, %v1172_v52  ;;  %v3748_v23 = vld [vmem:[#allocation2 + $0x10] sm:$0xf]  ;;  %v3751_v25 = vld [vmem:[#allocation2 + $0x14] sm:$0x1]  ;;  %v3767_v34 = vld [vmem:[#allocation2 + $0x24] sm:$0x1] }
 0x140   : > { %1183 = vst [vmem:[#allocation2 + $0x38] sm:$0xf] %v1182_v0  ;;  %1186 = vst [vmem:[#allocation2 + $0x3c] sm:$0x1] %v1185_v17  ;;  %v1117_v11 = vrot.slane %v1115_v61, 7  ;;  %v1101_v15 = vrot.slane %v1099_v53, 7  ;;  %v1223_v56 = vsel %vm3503_vm3, %v3721_v28, %v3725_v44 }
 0x141   : > { %1171 = vst [vmem:[#allocation2 + $0x28] sm:$0xf] %v1170_v4  ;;  %1174 = vst [vmem:[#allocation2 + $0x2c] sm:$0x1] %v1173_v5  ;;  %v1225_v21 = vshrl.u32 %v3734_v63, 16  ;;  %v1228_v22 = vshll.u32 %v3734_v63, 16 }
 0x142   : > { %v1234_v24 = vshll.u32 %v3744_v10, 16  ;;  %v1239_v26 = vshrl.u32 %v3748_v23, 16  ;;  %v1242_v27 = vshll.u32 %v3748_v23, 16  ;;  %v1120_v31 = vor.u32 %v1118_v62, %v1117_v11  ;;  %v1522_v50 = vld [vmem:[#allocation2 + $0x20] sm:$0xe] }
 0x143   : > { %v1121_v32 = vrot.slane %v1117_v11, 4  ;;  %v1104_v1 = vor.u32 %v1102_v57, %v1101_v15  ;;  %v1105_v36 = vrot.slane %v1101_v15, 4  ;;  %v1227_v37 = vrot.slane %v1225_v21, 4 }
 0x144   : > { %v1230_v38 = vrot.slane %v1228_v22, 5  ;;  %v1241_v40 = vrot.slane %v1239_v26, 4  ;;  %v1188_v43 = vsel %vm3686_vm9, %v1120_v31, %v1187_v6  ;;  %v1244_v47 = vrot.slane %v1242_v27, 5 }
 0x145   : > { %v1191_v46 = vsel %vm3693_vm10, %v1121_v32, %v1190_v7  ;;  %v1176_v12 = vsel %vm3686_vm9, %v1104_v1, %v1175_v8  ;;  %v1179_v13 = vsel %vm3693_vm10, %v1105_v36, %v1178_v9  ;;  %1189 = vst [vmem:[#allocation2 + $0x40] sm:$0xf] %v1188_v43  ;;  %v1248_v49 = vshll.u32 %v3751_v25, 16 }
 0x146   : > { %1192 = vst [vmem:[#allocation2 + $0x44] sm:$0x1] %v1191_v46  ;;  %1177 = vst [vmem:[#allocation2 + $0x30] sm:$0xf] %v1176_v12  ;;  %v1231_v20 = vor.u32 %v1230_v38, %v1227_v37  ;;  %v3772_v51 = vsel %vm1349_vm6, %v3658_v18, 0  ;;  %v1236_v48 = vrot.slane %v1234_v24, 5  ;;  %v1245_v2 = vor.u32 %v1244_v47, %v1241_v40 }
 0x147   : > { %1180 = vst [vmem:[#allocation2 + $0x34] sm:$0x1] %v1179_v13  ;;  %v1255_v52 = vrot.slane %v1253_v30, 4  ;;  %v1256_v55 = vshll.u32 %v3732_v60, 16  ;;  %v1262_v54 = vshll.u32 %v3756_v39, 16  ;;  %v1276_v3 = vshll.u32 %v3767_v34, 16 }
 0x148   : > { %v1232_v35 = vrot.slane %v1231_v20, 4  ;;  %v3780_v59 = vld [vmem:[#allocation2 + $0x2c] sm:$0x1]  ;;  %v1523_v61 = vld [vmem:[#allocation2 + $0x28] sm:$0xe]  ;;  %v1250_v62 = vrot.slane %v1248_v49, 5 }
 0x149   : > { %v3783_v18 = vld [vmem:[#allocation2 + $0x20] sm:$0xf]  ;;  %v1258_v53 = vrot.slane %v1256_v55, 5  ;;  %v1264_v57 = vrot.slane %v1262_v54, 5  ;;  %v2976_v0 = vrot.slane %v1522_v50, 9  ;;  %v1246_v5 = vrot.slane %v1245_v2, 4 }
 0x14a   : > { %v3785_v17 = vld [vmem:[#allocation2 + $0x3c] sm:$0x1]  ;;  %v1237_v4 = vsel %vm3503_vm3, %v1232_v35, %v1236_v48  ;;  %v1563_v28 = vrot.slane %v3767_v34, 5  ;;  %v2977_v44 = vrot.slane %v1523_v61, 9  ;;  %v1525_v6 = vld [vmem:[#allocation2 + $0x38] sm:$0xe] }
 0x14b   : > { %v2956_v7 = vcombine.low %v1223_v56, %v1237_v4  ;;  %v1259_v8 = vor.u32 %v1258_v53, %v1255_v52  ;;  %v1290_v9 = vshll.u32 %v3780_v59, 16  ;;  %v1567_v11 = vrot.slane %v3780_v59, 5  ;;  %v3792_v15 = vld [vmem:[#allocation2 + $0x28] sm:$0xf]  ;;  %v3817_v47 = vld [vmem:[#allocation2 + $0x38] sm:$0xf] }
 0x14c   : > { %v1251_v21 = vsel %vm3503_vm3, %v1246_v5, %v1250_v62  ;;  %v2979_v24 = vrot.slane %v1525_v6, 9  ;;  %v1575_v26 = vrot.slane %v3785_v17, 5  ;;  %v1564_v30 = vsel %vm3798_vm14, %v2976_v0, %v1563_v28  ;;  %v2998_v2 = vld [vmem:[%s4123_s3 + $0x10] sm:$0xf] }
 0x14d   : > { %3178 = vmatprep.mubr.msk.bf16.mxu0 %vm1336_vm13, %v2956_v7  ;;  %v1260_v27 = vrot.slane %v1259_v8, 4  ;;  %v1568_v31 = vsel %vm3798_vm14, %v2977_v44, %v1567_v11  ;;  %v1524_v1 = vld [vmem:[#allocation2 + $0x30] sm:$0xe]  ;;  %v1267_v36 = vshrl.u32 %v3783_v18, 16  ;;  %v1270_v34 = vshll.u32 %v3783_v18, 16 }
 0x14e   : > { %v1208_v32 = vld [vmem:[#allocation2 + $0x34] sm:$0x1]  ;;  %v2983_v37 = vcombine.low %v1564_v30, %v1568_v31  ;;  %v2978_v38 = vrot.slane %v1524_v1, 9  ;;  %v1576_v43 = vsel %vm3798_vm14, %v2979_v24, %v1575_v26  ;;  %v3811_v46 = vld [vmem:[#allocation2 + $0x30] sm:$0xf]  ;;  %v1281_v20 = vshrl.u32 %v3792_v15, 16 }
 0x14f   : > { %v1571_v40 = vrot.slane %v1208_v32, 5  ;;  %v1265_v12 = vsel %vm3503_vm3, %v1260_v27, %v1264_v57  ;;  %v1269_v13 = vrot.slane %v1267_v36, 4  ;;  %v1284_v48 = vshll.u32 %v3792_v15, 16  ;;  %v3388_v59 = vld [vmem:[#allocation2 + $0x8] ss:$8 sps:$4 sm:$0xff]  }
 0x150   : > { %v2957_v49 = vcombine.low %v1251_v21, %v1265_v12  ;;  %3202 = vmatprep.mubr.msk.bf16.mxu1 %vm1336_vm13, %v2983_v37  ;;  %v1295_v52 = vshrl.u32 %v3811_v46, 16  ;;  %v1272_v54 = vrot.slane %v1270_v34, 5  ;;  %v1283_v56 = vrot.slane %v1281_v20, 4  ;;  %v1797_v44 = vld [vmem:[#allocation2 + $0x8] sm:$0xf] }
 0x151   : > { %v1572_v50 = vsel %vm3798_vm14, %v2978_v38, %v1571_v40  ;;  %v1298_v35 = vshll.u32 %v3811_v46, 16  ;;  %v1286_v61 = vrot.slane %v1284_v48, 5  ;;  %v1304_v53 = vshll.u32 %v1208_v32, 16  ;;  %v1799_v21 = vld [vmem:[#allocation2 + $0x10] sm:$0xf] }
 0x152   : > { %v2984_v55 = vcombine.low %v1572_v50, %v1576_v43  ;;  %3179 = vmatmul.mubr.msk.bf16.vlgmr.msra.gmra.mrb[8].mxu0 %vm1336_vm13, %v2957_v49  ;;  %v1297_v62 = vrot.slane %v1295_v52, 4  ;;  %v1309_v57 = vshrl.u32 %v3817_v47, 16  ;;  %v1273_v0 = vor.u32 %v1272_v54, %v1269_v13  ;;  %v3846_v40 = vld [vmem:[#allocation2 + $0x14] sm:$0x1]  ;;  %v1801_v12 = vld [vmem:[#allocation2 + $0x18] sm:$0xf] }
 0x153   : > { %v1300_v4 = vrot.slane %v1298_v35, 5  ;;  %v1312_v5 = vshll.u32 %v3817_v47, 16  ;;  %v1318_v28 = vshll.u32 %v3785_v17, 16  ;;  %3187 = vmatpush3.bf16.msra.mxu0 %v3772_v51  ;;  %v1278_v6 = vrot.slane %v1276_v3, 5  ;;  %v3840_v17 = vld [vmem:[#allocation2 + $0xc] sm:$0x1] }
 0x154   : > { %3203 = vmatmul.mubr.msk.bf16.vlgmr.msra.gmra.mrb[0].mxu1 %vm1336_vm13, %v2984_v55  ;;  %v1287_v7 = vor.u32 %v1286_v61, %v1283_v56  ;;  %v1311_v8 = vrot.slane %v1309_v57, 4  ;;  %v1952_v11 = vsel %vm1349_vm6, %v2998_v2, 0  ;;  %v1292_v24 = vrot.slane %v1290_v9, 5  ;;  %3358 = vmatprep.subr.msk.bf16.mxu0 %vm1349_vm6, %v3637_v14  ;;  %v3390_v49 = vld [vmem:[#allocation2 + $0x18] ss:$8 sps:$4 sm:$0xff]  }
 0x155   : > { %3207 = vmatpush3.bf16.msra.mxu1 %v3729_v58  ;;  %3208 = vmatprep.mubr.msk.bf16.mxu1 %vm1336_vm13, %v3388_v59  ;;  %v1274_v26 = vrot.slane %v1273_v0, 4  ;;  %v1301_v27 = vor.u32 %v1300_v4, %v1297_v62  ;;  %v1314_v30 = vrot.slane %v1312_v5, 5  ;;  %v1306_v3 = vrot.slane %v1304_v53, 5  ;;  %v3391_v48 = vld [vmem:[#allocation2 + $0x28] ss:$8 sps:$4 sm:$0xff]  }
 0x156   : > { %3361 = vmatprep.subr.msk.bf16.mxu1 %vm1349_vm6, %v2998_v2  ;;  %v1288_v51 = vrot.slane %v1287_v7, 4  ;;  %v1814_v58 = vshrl.u32 %v1797_v44, 16  ;;  %v1817_v31 = vshll.u32 %v1797_v44, 16  ;;  %v1320_v36 = vrot.slane %v1318_v28, 5  ;;  %v3854_v56 = vld [vmem:[%s4123_s3 + $0x14] sm:$0xf] }
 0x157   : > { %v1302_v32 = vrot.slane %v1301_v27, 4  ;;  %v1315_v1 = vor.u32 %v1314_v30, %v1311_v8  ;;  %v1828_v37 = vshrl.u32 %v1799_v21, 16  ;;  %v1279_v9 = vsel %vm3503_vm3, %v1274_v26, %v1278_v6  ;;  %v1519_v59 = vld [vmem:[#allocation2 + $0x8] sm:$0xe]  ;;  %v1803_v61 = vld [vmem:[#allocation2 + $0x20] sm:$0xf] }
 0x158   : > { %v1293_v38 = vsel %vm3503_vm3, %v1288_v51, %v1292_v24  ;;  %v1816_v43 = vrot.slane %v1814_v58, 4  ;;  %v1819_v14 = vrot.slane %v1817_v31, 5  ;;  %v1823_v50 = vshll.u32 %v3840_v17, 16  ;;  %v3872_v5 = vld [vmem:[#allocation2 + $0x1c] sm:$0x1] }
 0x159   : > { %v2958_v13 = vcombine.low %v1279_v9, %v1293_v38  ;;  %v1307_v34 = vsel %vm3503_vm3, %v1302_v32, %v1306_v3  ;;  %v1316_v20 = vrot.slane %v1315_v1, 4  ;;  %v1830_v55 = vrot.slane %v1828_v37, 4  ;;  %v1805_v6 = vld [vmem:[#allocation2 + $0x28] sm:$0xf]  ;;  %v3878_v8 = vld [vmem:[#allocation2 + $0x24] sm:$0x1] }
 0x15a   : > { %v1820_v52 = vor.u32 %v1819_v14, %v1816_v43  ;;  %v1831_v54 = vshll.u32 %v1799_v21, 16  ;;  %v1837_v2 = vshll.u32 %v3846_v40, 16  ;;  %v1842_v62 = vshrl.u32 %v1801_v12, 16  ;;  %v1807_v26 = vld [vmem:[#allocation2 + $0x30] sm:$0xf] }
 0x15b   : > { %3182 = vmatprep.mubr.msk.bf16.mxu0 %vm1336_vm13, %v2958_v13  ;;  %v1321_v35 = vsel %vm3503_vm3, %v1316_v20, %v1320_v36  ;;  %v2964_v57 = vcombine.low %v3662_v19, %v3734_v63  ;;  %v3870_v4 = vsel %vm3798_vm14, %v2972_v33, %v1547_v42  ;;  %v1825_v44 = vrot.slane %v1823_v50, 5  ;;  %v3394_v58 = vld [vmem:[#allocation2 + $0x38] ss:$8 sps:$4 sm:$0xff]   ;;  %v3887_v37 = vld [vmem:[#allocation2 + $0x2c] sm:$0x1] }
 0x15c   : > { %3209 = vmatmul.mubr.msk.bf16.vlgmr.msra.gmra.mrb[4].mxu1 %vm1336_vm13, %v3390_v49  ;;  %v2959_v53 = vcombine.low %v1307_v34, %v1321_v35  ;;  %v1833_v0 = vrot.slane %v1831_v54, 5  ;;  %v1821_v28 = vrot.slane %v1820_v52, 4  ;;  %v1844_v19 = vrot.slane %v1842_v62, 4  ;;  %v3894_v20 = vld [vmem:[#allocation2 + $0x34] sm:$0x1] }
 0x15d   : > { %3217 = vmatpush3.bf16.msra.mxu1 %v1952_v11  ;;  %3212 = vmatprep.mubr.msk.bf16.mxu1 %vm1336_vm13, %v3391_v48  ;;  %v1845_v63 = vshll.u32 %v1801_v12, 16  ;;  %v2973_v41 = vrot.slane %v1519_v59, 9  ;;  %v1551_v45 = vrot.slane %v3744_v10, 5  ;;  %v1856_v33 = vshrl.u32 %v1803_v61, 16  ;;  %v1809_v49 = vld [vmem:[#allocation2 + $0x38] sm:$0xf] }
 0x15e   : > { %3362 = vmatprep.subr.msk.bf16.mxu1 %vm1349_vm6, %v3854_v56  ;;  %3183 = vmatmul.mubr.msk.bf16.gmra.mrb[12].mxu0 %vm1336_vm13, %v2959_v53  ;;  %v1834_v7 = vor.u32 %v1833_v0, %v1830_v55  ;;  %v1839_v42 = vrot.slane %v1837_v2, 5  ;;  %v1851_v21 = vshll.u32 %v3872_v5, 16  ;;  %v1859_v24 = vshll.u32 %v1803_v61, 16  ;;  %v1811_v54 = vld [vmem:[#allocation2 + $0x40] sm:$0xf] }
 0x15f   : > { %3188 = vmatprep.mubr.msk.bf16.mxu0 %vm1336_vm13, %v2964_v57  ;;  %v1847_v11 = vrot.slane %v1845_v63, 5  ;;  %v1858_v30 = vrot.slane %v1856_v33, 4  ;;  %v1870_v51 = vshrl.u32 %v1805_v6, 16  ;;  %v1873_v3 = vshll.u32 %v1805_v6, 16  ;;  %v1520_v62 = vld [vmem:[#allocation2 + $0x10] sm:$0xe] }
 0x160   : > { %v1835_v27 = vrot.slane %v1834_v7, 4  ;;  %v1826_v31 = vsel %vm3503_vm3, %v1821_v28, %v1825_v44  ;;  %v1861_v32 = vrot.slane %v1859_v24, 5  ;;  %v1865_v1 = vshll.u32 %v3878_v8, 16  ;;  %v3904_v53 = vld [vmem:[#allocation2 + $0x3c] sm:$0x1] }
 0x161   : > { %v1848_v10 = vor.u32 %v1847_v11, %v1844_v19  ;;  %v1872_v9 = vrot.slane %v1870_v51, 4  ;;  %v1875_v38 = vrot.slane %v1873_v3, 5  ;;  %v1884_v43 = vshrl.u32 %v1807_v26, 16  ;;  %v3912_v44 = vld [vmem:[#allocation2 + $0x44] sm:$0x1] }
 0x162   : > { %v1840_v36 = vsel %vm3503_vm3, %v1835_v27, %v1839_v42  ;;  %v2965_v14 = vcombine.low %v3748_v23, %v3732_v60  ;;  %v2966_v12 = vcombine.low %v3783_v18, %v3792_v15  ;;  %v1862_v34 = vor.u32 %v1861_v32, %v1858_v30  ;;  %v2027_v32 = vld [vmem:[#allocation2 + $0x8] sm:$0xe] }
 0x163   : > { %v2999_v13 = vcombine.low %v1826_v31, %v1840_v36  ;;  %v1849_v50 = vrot.slane %v1848_v10, 4  ;;  %v1876_v48 = vor.u32 %v1875_v38, %v1872_v9  ;;  %v1886_v52 = vrot.slane %v1884_v43, 4 }
 0x164   : > { %3213 = vmatmul.mubr.msk.bf16.gmra.mrb[0].mxu1 %vm1336_vm13, %v3394_v58  ;;  %v1887_v55 = vshll.u32 %v1807_v26, 16  ;;  %v1552_v60 = vsel %vm3798_vm14, %v2973_v41, %v1551_v45  ;;  %v1863_v23 = vrot.slane %v1862_v34, 4  ;;  %v1867_v35 = vrot.slane %v1865_v1, 5  ;;  %v2028_v41 = vld [vmem:[#allocation2 + $0x10] sm:$0xe] }
 0x165   : > { %3218 = vmatprep.mubr.msk.bf16.mxu1 %vm1336_vm13, %v2999_v13  ;;  %v1879_v18 = vshll.u32 %v3887_v37, 16  ;;  %v1853_v15 = vrot.slane %v1851_v21, 5  ;;  %v2110_v2 = vsel %vm1349_vm6, %v3854_v56, 0  ;;  %v1893_v61 = vshll.u32 %v3894_v20, 16  ;;  %v1521_v26 = vld [vmem:[#allocation2 + $0x18] sm:$0xe] }
 0x166   : > { %3189 = vmatmul.mubr.msk.bf16.vlgmr.msra.gmra.mrb[8].mxu0 %vm1336_vm13, %v2965_v14  ;;  %v1889_v59 = vrot.slane %v1887_v55, 5  ;;  %v2967_v57 = vcombine.low %v3811_v46, %v3817_v47  ;;  %v1868_v0 = vsel %vm3503_vm3, %v1863_v23, %v1867_v35  ;;  %v1877_v28 = vrot.slane %v1876_v48, 4  ;;  %v3920_v46 = vld [vmem:[%s4123_s3 + $0x18] sm:$0xf]  ;;  %v2030_v55 = vld [vmem:[#allocation2 + $0x20] sm:$0xe] }
 0x167   : > { %3192 = vmatprep.mubr.msk.bf16.mxu0 %vm1336_vm13, %v2966_v12  ;;  %3197 = vmatpush3.bf16.msra.mxu0 %v3645_v16  ;;  %v1898_v56 = vshrl.u32 %v1809_v49, 16  ;;  %v2981_v19 = vcombine.low %v3870_v4, %v1552_v60  ;;  %v1854_v63 = vsel %vm3503_vm3, %v1849_v50, %v1853_v15  ;;  %v1901_v7 = vshll.u32 %v1809_v49, 16 }
 0x168   : > { %v1890_v6 = vor.u32 %v1889_v59, %v1886_v52  ;;  %v3000_v47 = vcombine.low %v1854_v63, %v1868_v0  ;;  %v1881_v45 = vrot.slane %v1879_v18, 5  ;;  %v1912_v16 = vshrl.u32 %v1811_v54, 16  ;;  %v2029_v18 = vld [vmem:[#allocation2 + $0x18] sm:$0xe] }
 0x169   : > { %v1900_v33 = vrot.slane %v1898_v56, 4  ;;  %v1895_v11 = vrot.slane %v1893_v61, 5  ;;  %v1903_v21 = vrot.slane %v1901_v7, 5  ;;  %v1915_v24 = vshll.u32 %v1811_v54, 16  ;;  %v2034_v7 = vld [vmem:[#allocation2 + $0x40] sm:$0xe] }
 0x16a   : > { %v1891_v42 = vrot.slane %v1890_v6, 4  ;;  %v1882_v4 = vsel %vm3503_vm3, %v1877_v28, %v1881_v45  ;;  %v2974_v27 = vrot.slane %v1520_v62, 9  ;;  %v1907_v30 = vshll.u32 %v3904_v53, 16  ;;  %v2031_v62 = vld [vmem:[#allocation2 + $0x28] sm:$0xe] }
 0x16b   : > { %v1914_v51 = vrot.slane %v1912_v16, 4  ;;  %v1904_v58 = vor.u32 %v1903_v21, %v1900_v33  ;;  %v1917_v31 = vrot.slane %v1915_v24, 5  ;;  %v1921_v10 = vshll.u32 %v3912_v44, 16  ;;  %v2033_v45 = vld [vmem:[#allocation2 + $0x38] sm:$0xe] }
 0x16c   : > { %3219 = vmatmul.mubr.msk.bf16.vlgmr.msra.gmra.mrb[4].mxu1 %vm1336_vm13, %v3000_v47  ;;  %v1896_v3 = vsel %vm3503_vm3, %v1891_v42, %v1895_v11  ;;  %v1555_v36 = vrot.slane %v3751_v25, 5  ;;  %v3008_v9 = vrot.slane %v2028_v41, 9  ;;  %v2057_v38 = vrot.slane %v3846_v40, 5  ;;  %v3033_v42 = vld [vmem:[%s4123_s3 + $0x1c] sm:$0xf] }
 0x16d   : > { %3227 = vmatpush3.bf16.msra.mxu1 %v2110_v2  ;;  %v3001_v1 = vcombine.low %v1882_v4, %v1896_v3  ;;  %v1905_v43 = vrot.slane %v1904_v58, 4  ;;  %v1918_v14 = vor.u32 %v1917_v31, %v1914_v51  ;;  %v2975_v12 = vrot.slane %v1521_v26, 9  ;;  %v2304_v21 = vld [vmem:[#allocation2 + $0x10] sm:$0xf]  ;;  %v2306_v4 = vld [vmem:[#allocation2 + $0x18] sm:$0xf] }
 0x16e   : > { %3363 = vmatprep.subr.msk.bf16.mxu1 %vm1349_vm6, %v3920_v46  ;;  %3193 = vmatmul.mubr.msk.bf16.gmra.mrb[12].mxu0 %vm1336_vm13, %v2967_v57  ;;  %v1559_v13 = vrot.slane %v3756_v39, 5  ;;  %v3007_v34 = vrot.slane %v2027_v32, 9  ;;  %v2053_v25 = vrot.slane %v3840_v17, 5  ;;  %v1909_v49 = vrot.slane %v1907_v30, 5  ;;  %v2032_v39 = vld [vmem:[#allocation2 + $0x30] sm:$0xe] }
 0x16f   : > { %3198 = vmatprep.mubr.msk.bf16.mxu0 %vm1336_vm13, %v2981_v19  ;;  %3222 = vmatprep.mubr.msk.bf16.mxu1 %vm1336_vm13, %v3001_v1  ;;  %v1919_v50 = vrot.slane %v1918_v14, 4  ;;  %v1923_v40 = vrot.slane %v1921_v10, 5  ;;  %v1556_v48 = vsel %vm3798_vm14, %v2974_v27, %v1555_v36  ;;  %v2058_v52 = vsel %vm3798_vm14, %v3008_v9, %v2057_v38  ;;  %v3396_v58 = vld [vmem:[#allocation2 + $0x10] ss:$8 sps:$4 sm:$0xff]   ;;  %v2310_v10 = vld [vmem:[#allocation2 + $0x28] sm:$0xf] }
 0x170   : > { %v1910_v54 = vsel %vm3503_vm3, %v1905_v43, %v1909_v49  ;;  %v1560_v17 = vsel %vm3798_vm14, %v2975_v12, %v1559_v13  ;;  %v2054_v35 = vsel %vm3798_vm14, %v3007_v34, %v2053_v25  ;;  %v3010_v59 = vrot.slane %v2030_v55, 9  ;;  %v2312_v32 = vld [vmem:[#allocation2 + $0x30] sm:$0xf]  ;;  %v2308_v9 = vld [vmem:[#allocation2 + $0x20] sm:$0xf] }
 0x171   : > { %v1924_v60 = vsel %vm3503_vm3, %v1919_v50, %v1923_v40  ;;  %v2982_v15 = vcombine.low %v1556_v48, %v1560_v17  ;;  %v3016_v2 = vcombine.low %v2054_v35, %v2058_v52  ;;  %v2065_v61 = vrot.slane %v3878_v8, 5  ;;  %v3981_v38 = vld [vmem:[#allocation2 + $0x14] sm:$0x1]  ;;  %v2314_v12 = vld [vmem:[#allocation2 + $0x38] sm:$0xf] }
 0x172   : > { %v3002_v23 = vcombine.low %v1910_v54, %v1924_v60  ;;  %v3012_v57 = vrot.slane %v2032_v39, 9  ;;  %v2073_v0 = vrot.slane %v3894_v20, 5  ;;  %v3009_v28 = vrot.slane %v2029_v18, 9  ;;  %v2318_v49 = vld [vmem:[#allocation2 + $0x48] sm:$0xf] }
 0x173   : > { %v2061_v56 = vrot.slane %v3872_v5, 5  ;;  %v3011_v19 = vrot.slane %v2031_v62, 9  ;;  %v2069_v63 = vrot.slane %v3887_v37, 5  ;;  %v2066_v6 = vsel %vm3798_vm14, %v3010_v59, %v2065_v61  ;;  %v3984_v40 = vld [vmem:[#allocation2 + $0x1c] sm:$0x1] }
 0x174   : > { %3223 = vmatmul.mubr.msk.bf16.gmra.mrb[0].mxu1 %vm1336_vm13, %v3002_v23  ;;  %v2074_v8 = vsel %vm3798_vm14, %v3012_v57, %v2073_v0  ;;  %v2229_v47 = vsel %vm1349_vm6, %v3920_v46, 0  ;;  %v3014_v37 = vrot.slane %v2034_v7, 9  ;;  %v2081_v16 = vrot.slane %v3912_v44, 5  ;;  %v3397_v55 = vld [vmem:[#allocation2 + $0x20] ss:$8 sps:$4 sm:$0xff]  }
 0x175   : > { %3228 = vmatprep.mubr.msk.bf16.mxu1 %vm1336_vm13, %v3016_v2  ;;  %v2062_v20 = vsel %vm3798_vm14, %v3009_v28, %v2061_v56  ;;  %v2070_v5 = vsel %vm3798_vm14, %v3011_v19, %v2069_v63  ;;  %v3013_v11 = vrot.slane %v2033_v45, 9  ;;  %v2077_v46 = vrot.slane %v3904_v53, 5  ;;  %v3398_v23 = vld [vmem:[#allocation2 + $0x30] ss:$8 sps:$4 sm:$0xff]   ;;  %v3990_v35 = vld [vmem:[%s4123_s3 + $0x20] sm:$0xf] }
 0x176   : > { %3199 = vmatmul.mubr.msk.bf16.vlgmr.msra.gmra.mrb[8].mxu0 %vm1336_vm13, %v2982_v15  ;;  %v3017_v41 = vcombine.low %v2062_v20, %v2066_v6  ;;  %v3018_v33 = vcombine.low %v2070_v5, %v2074_v8  ;;  %v2082_v24 = vsel %vm3798_vm14, %v3014_v37, %v2081_v16  ;;  %v2321_v44 = vshrl.u32 %v2304_v21, 16  ;;  %v2316_v57 = vld [vmem:[#allocation2 + $0x40] sm:$0xf]  ;;  %v3997_v8 = vld [vmem:[#allocation2 + $0x2c] sm:$0x1] }
 0x177   : > { %v2324_v26 = vshll.u32 %v2304_v21, 16  ;;  %v2078_v27 = vsel %vm3798_vm14, %v3013_v11, %v2077_v46  ;;  %v2335_v51 = vshrl.u32 %v2306_v4, 16  ;;  %v2338_v3 = vshll.u32 %v2306_v4, 16  ;;  %v4001_v5 = vld [vmem:[#allocation2 + $0x34] sm:$0x1] }
 0x178   : > { %v3019_v30 = vcombine.low %v2078_v27, %v2082_v24  ;;  %v2323_v31 = vrot.slane %v2321_v44, 4  ;;  %v2363_v43 = vshrl.u32 %v2310_v10, 16  ;;  %v2366_v14 = vshll.u32 %v2310_v10, 16  ;;  %v4006_v21 = vld [vmem:[#allocation2 + $0x3c] sm:$0x1] }
 0x179   : > { %v2326_v53 = vrot.slane %v2324_v26, 5  ;;  %v2337_v1 = vrot.slane %v2335_v51, 4  ;;  %v2340_v36 = vrot.slane %v2338_v3, 5  ;;  %v2377_v34 = vshrl.u32 %v2312_v32, 16  ;;  %v3399_v44 = vld [vmem:[#allocation2 + $0x40] ss:$8 sps:$4 sm:$0xff]  }
 0x17a   : > { %v2380_v25 = vshll.u32 %v2312_v32, 16  ;;  %v2459_v50 = vsel %vm1349_vm6, %v3033_v42, 0  ;;  %v2349_v48 = vshrl.u32 %v2308_v9, 16  ;;  %v2352_v52 = vshll.u32 %v2308_v9, 16 }
 0x17b   : > { %v2327_v13 = vor.u32 %v2326_v53, %v2323_v31  ;;  %v2330_v54 = vshll.u32 %v3981_v38, 16  ;;  %v2341_v60 = vor.u32 %v2340_v36, %v2337_v1  ;;  %v2391_v39 = vshrl.u32 %v2314_v12, 16 }
 0x17c   : > { %3229 = vmatmul.mubr.msk.bf16.vlgmr.msra.gmra.mrb[4].mxu1 %vm1336_vm13, %v3017_v41  ;;  %v2394_v17 = vshll.u32 %v2314_v12, 16  ;;  %v2365_v18 = vrot.slane %v2363_v43, 4  ;;  %v2368_v15 = vrot.slane %v2366_v14, 5  ;;  %v2344_v59 = vshll.u32 %v3984_v40, 16  ;;  %v3999_v41 = vld [vmem:[#allocation2 + $0x24] sm:$0x1] }
 0x17d   : > { %3237 = vmatpush3.bf16.msra.mxu1 %v2229_v47  ;;  %3232 = vmatprep.mubr.msk.bf16.mxu1 %vm1336_vm13, %v3018_v33  ;;  %v2328_v2 = vrot.slane %v2327_v13, 4  ;;  %v2379_v61 = vrot.slane %v2377_v34, 4  ;;  %v2382_v62 = vrot.slane %v2380_v25, 5  ;;  %v2351_v0 = vrot.slane %v2349_v48, 4  ;;  %v4015_v14 = vld [vmem:[#allocation2 + $0x44] sm:$0x1] }
 0x17e   : > { %3364 = vmatprep.subr.msk.bf16.mxu1 %vm1349_vm6, %v3033_v42  ;;  %v2354_v28 = vrot.slane %v2352_v52, 5  ;;  %v2419_v56 = vshrl.u32 %v2318_v49, 16  ;;  %v2422_v19 = vshll.u32 %v2318_v49, 16  ;;  %v2332_v63 = vrot.slane %v2330_v54, 5  ;;  %v4017_v12 = vld [vmem:[#allocation2 + $0x4c] sm:$0x1] }
 0x17f   : > { %v2342_v6 = vrot.slane %v2341_v60, 4  ;;  %v2393_v7 = vrot.slane %v2391_v39, 4  ;;  %v2396_v20 = vrot.slane %v2394_v17, 5  ;;  %v2369_v47 = vor.u32 %v2368_v15, %v2365_v18  ;;  %v2534_v60 = vld [vmem:[#allocation2 + $0x10] sm:$0xe] }
 0x180   : > { %v2405_v45 = vshrl.u32 %v2316_v57, 16  ;;  %v2408_v33 = vshll.u32 %v2316_v57, 16  ;;  %v2333_v37 = vsel %vm3503_vm3, %v2328_v2, %v2332_v63  ;;  %v2346_v16 = vrot.slane %v2344_v59, 5 }
 0x181   : > { %v2383_v42 = vor.u32 %v2382_v62, %v2379_v61  ;;  %v2355_v11 = vor.u32 %v2354_v28, %v2351_v0  ;;  %v2372_v46 = vshll.u32 %v3997_v8, 16  ;;  %v2421_v24 = vrot.slane %v2419_v56, 4  ;;  %v2535_v61 = vld [vmem:[#allocation2 + $0x18] sm:$0xe] }
 0x182   : > { %v2424_v4 = vrot.slane %v2422_v19, 5  ;;  %v2347_v26 = vsel %vm3503_vm3, %v2342_v6, %v2346_v16  ;;  %v2358_v27 = vshll.u32 %v3999_v41, 16  ;;  %v2397_v51 = vor.u32 %v2396_v20, %v2393_v7  ;;  %v2537_v6 = vld [vmem:[#allocation2 + $0x28] sm:$0xe]  ;;  %v2538_v7 = vld [vmem:[#allocation2 + $0x30] sm:$0xe] }
 0x183   : > { %v3034_v3 = vcombine.low %v2333_v37, %v2347_v26  ;;  %v2407_v31 = vrot.slane %v2405_v45, 4  ;;  %v2410_v53 = vrot.slane %v2408_v33, 5  ;;  %v2384_v10 = vrot.slane %v2383_v42, 4  ;;  %v2539_v37 = vld [vmem:[#allocation2 + $0x38] sm:$0xe] }
 0x184   : > { %3233 = vmatmul.mubr.msk.bf16.gmra.mrb[0].mxu1 %vm1336_vm13, %v3019_v30  ;;  %v2386_v30 = vshll.u32 %v4001_v5, 16  ;;  %v2400_v32 = vshll.u32 %v4006_v21, 16  ;;  %v2356_v1 = vrot.slane %v2355_v11, 4  ;;  %v2374_v36 = vrot.slane %v2372_v46, 5  ;;  %v2540_v26 = vld [vmem:[#allocation2 + $0x40] sm:$0xe] }
 0x185   : > { %3238 = vmatprep.mubr.msk.bf16.mxu1 %vm1336_vm13, %v3396_v58  ;;  %v2370_v58 = vrot.slane %v2369_v47, 4  ;;  %v2398_v43 = vrot.slane %v2397_v51, 4  ;;  %v2425_v13 = vor.u32 %v2424_v4, %v2421_v24  ;;  %v2360_v34 = vrot.slane %v2358_v27, 5  ;;  %v2536_v47 = vld [vmem:[#allocation2 + $0x20] sm:$0xe] }
 0x186   : > { %v2388_v9 = vrot.slane %v2386_v30, 5  ;;  %v2411_v49 = vor.u32 %v2410_v53, %v2407_v31  ;;  %v2402_v52 = vrot.slane %v2400_v32, 5  ;;  %v2414_v54 = vshll.u32 %v4015_v14, 16 }
 0x187   : > { %v2375_v25 = vsel %vm3503_vm3, %v2370_v58, %v2374_v36  ;;  %v2617_v17 = vsel %vm1349_vm6, %v3990_v35, 0  ;;  %v2426_v2 = vrot.slane %v2425_v13, 4  ;;  %v3042_v62 = vrot.slane %v2534_v60, 9 }
 0x188   : > { %v2389_v48 = vsel %vm3503_vm3, %v2384_v10, %v2388_v9  ;;  %v2412_v15 = vrot.slane %v2411_v49, 4  ;;  %v2560_v57 = vrot.slane %v3981_v38, 5  ;;  %v2416_v0 = vrot.slane %v2414_v54, 5 }
 0x189   : > { %v3043_v28 = vrot.slane %v2535_v61, 9  ;;  %v3045_v33 = vrot.slane %v2537_v6, 9  ;;  %v3046_v16 = vrot.slane %v2538_v7, 9  ;;  %v2576_v29 = vrot.slane %v4001_v5, 5 }
 0x18a   : > { %v2417_v56 = vsel %vm3503_vm3, %v2412_v15, %v2416_v0  ;;  %v2561_v63 = vsel %vm3798_vm14, %v3042_v62, %v2560_v57  ;;  %v3044_v42 = vrot.slane %v2536_v47, 9  ;;  %v2568_v11 = vrot.slane %v3999_v41, 5 }
 0x18b   : > { %v3047_v46 = vrot.slane %v2539_v37, 9  ;;  %v2580_v24 = vrot.slane %v4006_v21, 5  ;;  %v2584_v21 = vrot.slane %v4015_v14, 5  ;;  %v2588_v58 = vrot.slane %v4017_v12, 5 }
 0x18c   : > { %3239 = vmatmul.mubr.msk.bf16.vlgmr.msra.gmra.mrb[4].mxu1 %vm1336_vm13, %v3397_v55  ;;  %v2361_v55 = vsel %vm3503_vm3, %v2356_v1, %v2360_v34  ;;  %v2569_v27 = vsel %vm3798_vm14, %v3044_v42, %v2568_v11 }
 0x18d   : > { %3247 = vmatpush3.bf16.msra.mxu1 %v2459_v50  ;;  %3242 = vmatprep.mubr.msk.bf16.mxu1 %vm1336_vm13, %v3398_v23  ;;  %v2428_v50 = vshll.u32 %v4017_v12, 16  ;;  %v3035_v39 = vcombine.low %v2361_v55, %v2375_v25  ;;  %v2403_v23 = vsel %vm3503_vm3, %v2398_v43, %v2402_v52  ;;  %v2581_v30 = vsel %vm3798_vm14, %v3047_v46, %v2580_v24  ;;  %v3059_v25 = vld [vmem:[%s4124_s4] ss:$0 sm:$0xff] }
 0x18e   : > { %3365 = vmatprep.subr.msk.bf16.mxu1 %vm1349_vm6, %v3990_v35  ;;  %v3036_v18 = vcombine.low %v2389_v48, %v2403_v23  ;;  %v2564_v35 = vrot.slane %v3984_v40, 5  ;;  %v2572_v40 = vrot.slane %v3997_v8, 5  ;;  %v2577_v8 = vsel %vm3798_vm14, %v3046_v16, %v2576_v29 }
 0x18f   : > { %v2430_v59 = vrot.slane %v2428_v50, 5  ;;  %v3053_v41 = vcombine.low %v2577_v8, %v2581_v30 }
 0x190   : > { %v2565_v38 = vsel %vm3798_vm14, %v3043_v28, %v2564_v35  ;;  %v2573_v4 = vsel %vm3798_vm14, %v3045_v33, %v2572_v40 }
 0x191   : > { %v2431_v19 = vsel %vm3503_vm3, %v2426_v2, %v2430_v59  ;;  %v3051_v45 = vcombine.low %v2561_v63, %v2565_v38  ;;  %v3052_v5 = vcombine.low %v2569_v27, %v2573_v4 }
 0x192   : > { %v3037_v20 = vcombine.low %v2417_v56, %v2431_v19 }
 0x194   : > { %3243 = vmatmul.mubr.msk.bf16.gmra.mrb[0].mxu1 %vm1336_vm13, %v3399_v44  ;;  %v2541_v44 = vld [vmem:[#allocation2 + $0x48] sm:$0xe] }
 0x195   : > { %3248 = vmatprep.mubr.msk.bf16.mxu1 %vm1336_vm13, %v3034_v3  ;;  %v3049_v51 = vrot.slane %v2541_v44, 9  ;;  %v3048_v3 = vrot.slane %v2540_v26, 9 }
 0x197   : > { %v2585_v31 = vsel %vm3798_vm14, %v3048_v3, %v2584_v21  ;;  %v2589_v53 = vsel %vm3798_vm14, %v3049_v51, %v2588_v58 }
 0x198   : > { %v3054_v10 = vcombine.low %v2585_v31, %v2589_v53 }
 0x19c   : > { %3249 = vmatmul.mubr.msk.bf16.vlgmr.msra.gmra.mrb[4].mxu1 %vm1336_vm13, %v3035_v39 }
 0x19d   : > { %3257 = vmatpush3.bf16.msra.mxu1 %v2617_v17  ;;  %3252 = vmatprep.mubr.msk.bf16.mxu1 %vm1336_vm13, %v3036_v18 }
 0x1a4   : > { %3253 = vmatmul.mubr.msk.bf16.gmra.mrb[0].mxu1 %vm1336_vm13, %v3037_v20 }
 0x1a5   : > { %3258 = vmatprep.mubr.msk.bf16.mxu1 %vm1336_vm13, %v3051_v45 }
 0x1ac   : > { %3259 = vmatmul.mubr.msk.bf16.vlgmr.msra.gmra.mrb[4].mxu1 %vm1336_vm13, %v3052_v5 }
 0x1ad   : > { %3262 = vmatprep.mubr.msk.bf16.mxu1 %vm1336_vm13, %v3053_v41 }
 0x1b4   : > { %3263 = vmatmul.mubr.msk.bf16.gmra.mrb[0].mxu1 %vm1336_vm13, %v3054_v10 }
 0x241   : > { %v3194_v32 = vpop.f32.mrb[12].mxu0 }
 0x242   : > { %v1503_v1 = vpop.f32.mrb[13].mxu0 }
 0x243   : > { %v3195_v36 = vpop.f32.mrb[14].mxu0 }
 0x244   : > { %v1506_v9 = vpop.f32.mrb[15].mxu0 }
 0x249   : > { %v3200_v43 = vpop.f32.mrb[8].mxu0 }
 0x24a   : > { %v1640_v14 = vpop.f32.mrb[9].mxu0 }
 0x24b   : > { %v3201_v12 = vpop.f32.mrb[10].mxu0 }
 0x24c   : > { %v1643_v13 = vpop.f32.mrb[11].mxu0 }
 0x27f   : > { %v3260_v34 = vpop.f32.mrb[4].mxu1 }
 0x280   : > { %v3268_v49 = vadd.f32 %v3260_v34, %v3200_v43  ;;  %v2653_v22 = vpop.f32.mrb[5].mxu1 }
 0x281   : > { %v3269_v50 = vadd.f32 %v2653_v22, %v1640_v14  ;;  %v3261_v48 = vpop.f32.mrb[6].mxu1 }
 0x282   : > { %v2753_v52 = vadd.f32 %v3268_v49, %v3059_v25  ;;  %v3270_v55 = vadd.f32 %v3261_v48, %v3201_v12  ;;  %v2656_v54 = vpop.f32.mrb[7].mxu1  ;;  %v2716_v23 = vmul.f32 %v3268_v49, %v3268_v49  ;;  %v2695_v0 = vsel %vm1336_vm13, %v3268_v49, 0.0 }
 0x283   : > { %v2714_v60 = vmul.f32 %v3269_v50, %v3269_v50  ;;  %v2751_v39 = vadd.f32 %v3269_v50, %v3059_v25  ;;  %v3271_v17 = vadd.f32 %v2656_v54, %v1643_v13  ;;  %v2692_v15 = vsel %vm1336_vm13, %v3269_v50, 0.0 }
 0x284   : > { %2761 = vst.msk [vmem:[%s4073_s19 + $0x10] sm:$0xff] %vm1336_vm13, %v2753_v52  ;;  %v2754_v18 = vadd.f32 %v3270_v55, %v3059_v25  ;;  %v2717_v62 = vmul.f32 %v3270_v55, %v3270_v55  ;;  %v2725_v20 = vsel %vm1336_vm13, %v2716_v23, 0.0  ;;  %v2697_v45 = vsel %vm1336_vm13, %v3270_v55, 0.0 }
 0x285   : > { %2759 = vst.msk [vmem:[%s4073_s19] sm:$0xff] %vm1336_vm13, %v2751_v39  ;;  %v2693_v2 = vsel %vm1336_vm13, %v3271_v17, 0.0  ;;  %v2715_v59 = vmul.f32 %v3271_v17, %v3271_v17  ;;  %v2752_v61 = vadd.f32 %v3271_v17, %v3059_v25  ;;  %v2722_v28 = vsel %vm1336_vm13, %v2714_v60, 0.0 }
 0x286   : > { %2762 = vst.msk [vmem:[%s4073_s19 + $0x18] sm:$0xff] %vm1336_vm13, %v2754_v18  ;;  %v2694_v57 = vadd.f32 %v2693_v2, %v2692_v15  ;;  %v2727_v33 = vsel %vm1336_vm13, %v2717_v62, 0.0 }
 0x287   : > { %v2723_v35 = vsel %vm1336_vm13, %v2715_v59, 0.0  ;;  %2760 = vst.msk [vmem:[%s4073_s19 + $0x8] sm:$0xff] %vm1336_vm13, %v2752_v61  ;;  %v3264_v56 = vpop.f32.mrb[0].mxu1 }
 0x288   : > { %v2696_v19 = vadd.f32 %v2695_v0, %v2694_v57  ;;  %v2724_v63 = vadd.f32 %v2723_v35, %v2722_v28  ;;  %v3272_v6 = vadd.f32 %v3264_v56, %v3194_v32  ;;  %v2669_v7 = vpop.f32.mrb[1].mxu1 }
 0x289   : > { %v3273_v38 = vadd.f32 %v2669_v7, %v1503_v1  ;;  %v3265_v47 = vpop.f32.mrb[2].mxu1 }
 0x28a   : > { %v2726_v40 = vadd.f32 %v2725_v20, %v2724_v63  ;;  %v2757_v37 = vadd.f32 %v3272_v6, %v3059_v25  ;;  %v2672_v16 = vpop.f32.mrb[3].mxu1  ;;  %v2698_v29 = vadd.f32 %v2697_v45, %v2696_v19  ;;  %v3274_v4 = vadd.f32 %v3265_v47, %v3195_v36 }
 0x28b   : > { %v2699_v42 = vsel %vm1336_vm13, %v3273_v38, 0.0  ;;  %v2718_v11 = vmul.f32 %v3273_v38, %v3273_v38  ;;  %v2755_v46 = vadd.f32 %v3273_v38, %v3059_v25  ;;  %v3275_v44 = vadd.f32 %v2672_v16, %v1506_v9 }
 0x28c   : > { %2765 = vst.msk [vmem:[%s4073_s19 + $0x30] sm:$0xff] %vm1336_vm13, %v2757_v37  ;;  %v2728_v24 = vadd.f32 %v2727_v33, %v2726_v40  ;;  %v2700_v8 = vadd.f32 %v2699_v42, %v2698_v29  ;;  %v2758_v5 = vadd.f32 %v3274_v4, %v3059_v25  ;;  %v2720_v30 = vmul.f32 %v3272_v6, %v3272_v6 }
 0x28d   : > { %v2729_v26 = vsel %vm1336_vm13, %v2718_v11, 0.0  ;;  %2763 = vst.msk [vmem:[%s4073_s19 + $0x20] sm:$0xff] %vm1336_vm13, %v2755_v46  ;;  %v2701_v51 = vsel %vm1336_vm13, %v3275_v44, 0.0  ;;  %v2719_v41 = vmul.f32 %v3275_v44, %v3275_v44  ;;  %v2756_v3 = vadd.f32 %v3275_v44, %v3059_v25 }
 0x28e   : > { %v2730_v27 = vadd.f32 %v2729_v26, %v2728_v24  ;;  %2766 = vst.msk [vmem:[%s4073_s19 + $0x38] sm:$0xff] %vm1336_vm13, %v2758_v5  ;;  %v2702_v21 = vadd.f32 %v2701_v51, %v2700_v8  ;;  %v2703_v58 = vsel %vm1336_vm13, %v3272_v6, 0.0  ;;  %v2721_v31 = vmul.f32 %v3274_v4, %v3274_v4 }
 0x28f   : > { %v2731_v53 = vsel %vm1336_vm13, %v2719_v41, 0.0  ;;  %2764 = vst.msk [vmem:[%s4073_s19 + $0x28] sm:$0xff] %vm1336_vm13, %v2756_v3  ;;  %v2733_v1 = vsel %vm1336_vm13, %v2720_v30, 0.0  ;;  %v2705_v36 = vsel %vm1336_vm13, %v3274_v4, 0.0 }
 0x290   : > { %v2704_v10 = vadd.f32 %v2703_v58, %v2702_v21  ;;  %v2732_v32 = vadd.f32 %v2731_v53, %v2730_v27  ;;  %v2735_v14 = vsel %vm1336_vm13, %v2721_v31, 0.0 }
 0x292   : > { %v2706_v9 = vadd.f32 %v2705_v36, %v2704_v10  ;;  %v2734_v43 = vadd.f32 %v2733_v1, %v2732_v32 }
 0x294   : > { %v2707_v12 = vrot.slane %v2706_v9, 4  ;;  %v2736_v13 = vadd.f32 %v2735_v14, %v2734_v43 }
 0x296   : > { %v2708_v34 = vadd.f32 %v2707_v12, %v2706_v9  ;;  %v2737_v25 = vrot.slane %v2736_v13, 4 }
 0x298   : > { %v2709_v49 = vrot.slane %v2708_v34, 2  ;;  %v2738_v22 = vadd.f32 %v2737_v25, %v2736_v13 }
 0x29a   : > { %v2710_v50 = vadd.f32 %v2709_v49, %v2708_v34  ;;  %v2739_v48 = vrot.slane %v2738_v22, 2 }
 0x29c   : > { %v2711_v52 = vrot.slane %v2710_v50, 1  ;;  %v2740_v55 = vadd.f32 %v2739_v48, %v2738_v22 }
 0x29e   : > { %v2712_v54 = vadd.f32 %v2711_v52, %v2710_v50  ;;  %v2741_v60 = vrot.slane %v2740_v55, 1 }
 0x2a0   : > { %2713 = vst.msk [vmem:[%s292_s22] sm:$0x1] %vm1018_vm5, %v2712_v54  ;;  %v2742_v39 = vadd.f32 %v2741_v60, %v2740_v55 }
 0x2a2   : > { %2743 = vst.msk [vmem:[%s295_s27] sm:$0x1] %vm1018_vm5, %v2742_v39 }
 0x2a3 PF: > { %s18_s24 = sadd.s32 1, %s3406_s24  }
 0x2a4   : > { %p15_p4 = scmp.ge.s32.totalorder %s18_s24, 4  }
 0x2a6   :  { %17 = sbr.rel (!%p15_p4) target bundleno = 1 (0x1), region = 108 }

</bundles_post_ra>
